<compile_context>
chip_gen: v7x
topology: tpu7x:2x2x1
jax: 0.10.0
libtpu: 0.0.40
codegen_flags: <defaults>
</compile_context>

<pallas_src>
import functools

import jax
import jax.numpy as jnp
from jax.experimental import pallas as pl
from jax.experimental.pallas import tpu as pltpu

GIN_EPS = 0.0          # GINConv eps (PyG default, train_eps=False)
BN_EPS = 1e-5          # BatchNorm1d eps

TILE_M = 128           # node-row tile
TILE_K = 128           # neighbor-reduction tile
LANE = 128
SUBLANE = 8


def _round_up(x, m):
    return (x + m - 1) // m * m


def _pad2d(a, rows, cols):
    return jnp.pad(a, ((0, rows - a.shape[0]), (0, cols - a.shape[1])))


# ----------------------------------------------------------------------------
# Kernel 1: fused GINConv layer, grid = (N/tm rows, N/tk neighbor chunks)
#   acc += A_hat[i, k] @ x[k]                (bf16 x bf16 -> f32 MXU, per k)
#   on last k:  out[i] = relu( relu(acc @ W1' + b1') @ W2 + b2 )
#   (W1', b1' have eval-mode BatchNorm folded in; A_hat has (1+eps)*I folded in)
# ----------------------------------------------------------------------------
def gin_conv_kernel(a_ref, x_ref, w1_ref, b1_ref, w2_ref, b2_ref, o_ref, acc_ref):
    k = pl.program_id(1)

    @pl.when(k == 0)
    def _():
        acc_ref[...] = jnp.zeros_like(acc_ref)

    acc_ref[...] += jnp.dot(a_ref[...], x_ref[...],
                            preferred_element_type=jnp.float32)

    @pl.when(k == pl.num_programs(1) - 1)
    def _():
        h1 = jnp.dot(acc_ref[...], w1_ref[...],
                     preferred_element_type=jnp.float32) + b1_ref[...]
        h1 = jnp.maximum(h1, 0.0)
        h2 = jnp.dot(h1, w2_ref[...],
                     preferred_element_type=jnp.float32) + b2_ref[...]
        o_ref[...] = jnp.maximum(h2, 0.0).astype(o_ref.dtype)


def gin_conv(a_hat, x, w1, b1, w2, b2):
    """One fused GINConv layer on padded, lane-dense operands.

    a_hat: [Np, Np] bf16 (A + (1+eps)I), x: [Np, Fp] bf16,
    w1: [Fp, Hp] f32 (BN folded), b1: [1, Hp] f32, w2: [Hp, Hp], b2: [1, Hp].
    Returns bf16 node features [Np, Hp].
    """
    n_pad = a_hat.shape[0]
    f_pad = x.shape[1]
    h_pad = w2.shape[1]
    grid = (n_pad // TILE_M, n_pad // TILE_K)

    flops = (2 * n_pad * n_pad * f_pad          # A_hat @ x
             + 2 * n_pad * f_pad * h_pad        # @ W1
             + 2 * n_pad * h_pad * h_pad)       # @ W2
    bytes_accessed = (a_hat.size * 2 + x.size * 2 + n_pad * h_pad * 2
                      + 4 * (w1.size + b1.size + w2.size + b2.size))

    return pl.pallas_call(
        gin_conv_kernel,
        out_shape=jax.ShapeDtypeStruct((n_pad, h_pad), jnp.bfloat16),
        grid_spec=pltpu.PrefetchScalarGridSpec(
            num_scalar_prefetch=0,
            grid=grid,
            in_specs=[
                pl.BlockSpec((TILE_M, TILE_K), lambda i, k: (i, k)),   # A tile
                pl.BlockSpec((TILE_K, f_pad), lambda i, k: (k, 0)),    # x tile
                pl.BlockSpec((f_pad, h_pad), lambda i, k: (0, 0)),     # W1 (resident)
                pl.BlockSpec((1, h_pad), lambda i, k: (0, 0)),         # b1 (resident)
                pl.BlockSpec((h_pad, h_pad), lambda i, k: (0, 0)),     # W2 (resident)
                pl.BlockSpec((1, h_pad), lambda i, k: (0, 0)),         # b2 (resident)
            ],
            out_specs=pl.BlockSpec((TILE_M, h_pad), lambda i, k: (i, 0)),
            scratch_shapes=[pltpu.VMEM((TILE_M, f_pad), jnp.float32)],
        ),
        compiler_params=pltpu.CompilerParams(
            dimension_semantics=("parallel", "arbitrary"),
            vmem_limit_bytes=64 * 1024 * 1024,
        ),
        cost_estimate=pl.CostEstimate(flops=flops, transcendentals=0,
                                      bytes_accessed=bytes_accessed),
    )(a_hat, x, w1, b1, w2, b2)


# ----------------------------------------------------------------------------
# Kernel 2: global_add_pool + final Linear head, grid = (N/tk node chunks)
#   acc += P[:, k] @ h[k]        (segment sum over node tiles)
#   on last k:  out = acc @ Wlin + blin
# ----------------------------------------------------------------------------
def pool_head_kernel(p_ref, h_ref, w_ref, b_ref, o_ref, acc_ref):
    k = pl.program_id(0)

    @pl.when(k == 0)
    def _():
        acc_ref[...] = jnp.zeros_like(acc_ref)

    acc_ref[...] += jnp.dot(p_ref[...], h_ref[...].astype(jnp.float32),
                            preferred_element_type=jnp.float32)

    @pl.when(k == pl.num_programs(0) - 1)
    def _():
        o_ref[...] = jnp.dot(acc_ref[...], w_ref[...],
                             preferred_element_type=jnp.float32) + b_ref[...]


def pool_and_linear(pool_mat, h, w, b):
    g_pad, n_pad = pool_mat.shape
    h_pad = h.shape[1]
    c_pad = w.shape[1]
    grid = (n_pad // TILE_K,)
    return pl.pallas_call(
        pool_head_kernel,
        out_shape=jax.ShapeDtypeStruct((g_pad, c_pad), jnp.float32),
        grid_spec=pltpu.PrefetchScalarGridSpec(
            num_scalar_prefetch=0,
            grid=grid,
            in_specs=[
                pl.BlockSpec((g_pad, TILE_K), lambda k: (0, k)),   # P tile
                pl.BlockSpec((TILE_K, h_pad), lambda k: (k, 0)),   # h tile
                pl.BlockSpec((h_pad, c_pad), lambda k: (0, 0)),    # lin W (resident)
                pl.BlockSpec((1, c_pad), lambda k: (0, 0)),        # lin b (resident)
            ],
            out_specs=pl.BlockSpec((g_pad, c_pad), lambda k: (0, 0)),
            scratch_shapes=[pltpu.VMEM((g_pad, h_pad), jnp.float32)],
        ),
        compiler_params=pltpu.CompilerParams(
            dimension_semantics=("arbitrary",)),
    )(pool_mat, h, w, b)


# ----------------------------------------------------------------------------
# Parameter prep: fold eval-mode BatchNorm into W1/b1, zero-pad to lane-dense.
# ----------------------------------------------------------------------------
def prepare_inference_params(params, in_channels, hidden_channels, out_channels):
    h_pad = _round_up(hidden_channels, LANE)
    c_pad = _round_up(out_channels, LANE)
    prepared = {"convs": []}
    fin = in_channels
    for layer in params["convs"]:
        f_pad = _round_up(fin, LANE)
        bn_scale = layer["gamma"] / jnp.sqrt(layer["running_var"] + BN_EPS)
        bn_bias = layer["beta"] - layer["running_mean"] * bn_scale
        w1_folded = layer["w1"] * bn_scale                    # column-wise scale
        b1_folded = layer["b1"] * bn_scale + bn_bias
        prepared["convs"].append(dict(
            w1=_pad2d(w1_folded, f_pad, h_pad),
            b1=_pad2d(b1_folded, 1, h_pad),
            w2=_pad2d(layer["w2"], h_pad, h_pad),
            b2=_pad2d(layer["b2"], 1, h_pad),
        ))
        fin = hidden_channels
    prepared["lin_w"] = _pad2d(params["lin_w"], h_pad, c_pad)
    prepared["lin_b"] = _pad2d(params["lin_b"], 1, c_pad)
    return prepared


# ----------------------------------------------------------------------------
# GIN forward (eval mode): glue in plain JAX, hot path in Pallas kernels.
# ----------------------------------------------------------------------------
def gin_forward(prepared, adj, batch, x, *, num_graphs, out_channels):
    n, f_in = x.shape
    n_pad = _round_up(max(n, TILE_M), TILE_M)
    f_pad = _round_up(f_in, LANE)
    g_pad = _round_up(max(num_graphs, SUBLANE), SUBLANE)

    # Fold (1 + eps) * x self term into the adjacency; 0 / 1 / (1+eps) are
    # exactly representable in bf16, so the cast is lossless.
    a_hat = adj + (1.0 + GIN_EPS) * jnp.eye(n, dtype=adj.dtype)
    a_hat = _pad2d(a_hat, n_pad, n_pad).astype(jnp.bfloat16)

    h = _pad2d(x, n_pad, f_pad).astype(jnp.bfloat16)

    for layer in prepared["convs"]:
        h = gin_conv(a_hat, h, layer["w1"], layer["b1"], layer["w2"], layer["b2"])
        # Between layers: F.relu (identity after ReLU-terminated MLP) and
        # eval-mode dropout (identity) — nothing to do.

    # global_add_pool as one-hot P @ h, fused with the final Linear head.
    pool_mat = (batch[None, :] == jnp.arange(g_pad)[:, None]).astype(jnp.float32)
    pool_mat = _pad2d(pool_mat, g_pad, n_pad)
    out = pool_and_linear(pool_mat, h, prepared["lin_w"], prepared["lin_b"])
    return out[:num_graphs, :out_channels]


# ----------------------------------------------------------------------------
# Pure-JAX reference (unpadded) with the same precision policy as the kernels:
# adjacency / node features rounded to bf16 at the aggregation matmul, weights
# and accumulation in f32.
# ----------------------------------------------------------------------------
_DOT32 = functools.partial(jnp.matmul, precision=jax.lax.Precision.HIGHEST)


def gin_reference(params, adj, batch, x, num_graphs):
    def bf16_round(v):
        return v.astype(jnp.bfloat16).astype(jnp.float32)

    n = x.shape[0]
    a_hat = bf16_round(adj + (1.0 + GIN_EPS) * jnp.eye(n, dtype=adj.dtype))
    h = bf16_round(x)
    for layer in params["convs"]:
        bn_scale = layer["gamma"] / jnp.sqrt(layer["running_var"] + BN_EPS)
        bn_bias = layer["beta"] - layer["running_mean"] * bn_scale
        agg = _DOT32(a_hat, h)
        h1 = jnp.maximum((_DOT32(agg, layer["w1"]) + layer["b1"]) * bn_scale + bn_bias, 0.0)
        h = bf16_round(jnp.maximum(_DOT32(h1, layer["w2"]) + layer["b2"], 0.0))
    pool_mat = (batch[None, :] == jnp.arange(num_graphs)[:, None]).astype(jnp.float32)
    pooled = _DOT32(pool_mat, h)
    return _DOT32(pooled, params["lin_w"]) + params["lin_b"]


# ----------------------------------------------------------------------------
# Parameter init (PyTorch-style raw params, incl. non-trivial BN statistics).
# ----------------------------------------------------------------------------
def init_params(key, num_layers, in_channels, hidden_channels, out_channels):
    params = {"convs": []}
    fin = in_channels
    for _ in range(num_layers):
        key, k1, k2, k3, k4, k5, k6, k7, k8 = jax.random.split(key, 9)
        params["convs"].append(dict(
            w1=jax.random.normal(k1, (fin, hidden_channels), jnp.float32) * 0.2,
            b1=jax.random.normal(k2, (1, hidden_channels), jnp.float32) * 0.05,
            w2=jax.random.normal(k3, (hidden_channels, hidden_channels), jnp.float32) * 0.2,
            b2=jax.random.normal(k4, (1, hidden_channels), jnp.float32) * 0.05,
            gamma=1.0 + 0.1 * jax.random.normal(k5, (1, hidden_channels), jnp.float32),
            beta=0.05 * jax.random.normal(k6, (1, hidden_channels), jnp.float32),
            running_mean=0.1 * jax.random.normal(k7, (1, hidden_channels), jnp.float32),
            running_var=jax.random.uniform(k8, (1, hidden_channels), jnp.float32,
                                           minval=0.5, maxval=1.5),
        ))
        fin = hidden_channels
    key, k9, k10 = jax.random.split(key, 3)
    params["lin_w"] = jax.random.normal(k9, (hidden_channels, out_channels),
                                        jnp.float32) * 0.2
    params["lin_b"] = jax.random.normal(k10, (1, out_channels), jnp.float32) * 0.05
    return params


if __name__ == "__main__":
    num_layers = 3
    in_channels = 16
    hidden_channels = 32
    out_channels = 4
    num_graphs = 2
    nodes_per_graph = 100           # N = 200 -> padded to 256 -> 2x2 grid
    N = num_graphs * nodes_per_graph

    key = jax.random.PRNGKey(0)
    key, kx, kp = jax.random.split(key, 3)

    # Node features [N, in_channels]
    x = jax.random.normal(kx, (N, in_channels), jnp.float32)

    # Deterministic undirected ring + chord edges inside each graph -> dense A
    # with A[target, source] = 1 (sum aggregation).
    base = jnp.repeat(jnp.arange(num_graphs) * nodes_per_graph, nodes_per_graph)
    j = jnp.tile(jnp.arange(nodes_per_graph), num_graphs)
    src = base + j
    dst1 = base + (j + 1) % nodes_per_graph
    dst2 = base + (j + 3) % nodes_per_graph
    rows = jnp.concatenate([dst1, src, dst2, src])
    cols = jnp.concatenate([src, dst1, src, dst2])
    adj = jnp.zeros((N, N), jnp.float32).at[rows, cols].set(1.0)

    # batch assignment vector
    batch = jnp.repeat(jnp.arange(num_graphs), nodes_per_graph)

    params = init_params(kp, num_layers, in_channels, hidden_channels, out_channels)
    prepared = prepare_inference_params(params, in_channels, hidden_channels,
                                        out_channels)

    fwd = jax.jit(functools.partial(gin_forward, num_graphs=num_graphs,
                                    out_channels=out_channels))
    out = jax.block_until_ready(fwd(prepared, adj, batch, x))

    ref = gin_reference(params, adj, batch, x, num_graphs)

    assert out.shape == (num_graphs, out_channels), out.shape
    assert jnp.allclose(out, ref, atol=1e-2, rtol=1e-2), (out, ref)

    print("KERNEL_OK")
</pallas_src>

<mosaic_0001>
module attributes {stable_mosaic.version = 11 : i64} {
  func.func @pool_head_kernel(%arg0: i32, %arg1: memref<8x128xf32, #tpu.memory_space<vmem>>, %arg2: memref<128x128xbf16, #tpu.memory_space<vmem>>, %arg3: memref<128x128xf32, #tpu.memory_space<vmem>>, %arg4: memref<1x128xf32, #tpu.memory_space<vmem>>, %arg5: memref<8x128xf32, #tpu.memory_space<vmem>>, %arg6: memref<8x128xf32, #tpu.memory_space<vmem>>) attributes {dimension_semantics = [#tpu.dimension_semantics<arbitrary>], iteration_bounds = array<i64: 2>, scalar_prefetch = 0 : i64, scratch_operands = 1 : i64, tpu.core_type = #tpu.core_type<tc>, window_params = [{transform_indices = @transform_0, window_bounds = array<i64: 8, 128>}, {transform_indices = @transform_1, window_bounds = array<i64: 128, 128>}, {pipeline_mode = #tpu.pipeline_mode<synchronous>, transform_indices = @transform_2, window_bounds = array<i64: 128, 128>}, {pipeline_mode = #tpu.pipeline_mode<synchronous>, transform_indices = @transform_3, window_bounds = array<i64: 1, 128>}, {pipeline_mode = #tpu.pipeline_mode<synchronous>, transform_indices = @transform_4, window_bounds = array<i64: 8, 128>}]} {
    %c0_i32 = arith.constant 0 : i32
    %0 = arith.cmpi eq, %arg0, %c0_i32 : i32
    %1 = arith.extui %0 : i1 to i32
    %c0_i32_0 = arith.constant 0 : i32
    %2 = arith.cmpi ne, %1, %c0_i32_0 : i32
    scf.if %2 {
      %cst_9 = arith.constant 0.000000e+00 : f32
      %13 = vector.broadcast %cst_9 : f32 to vector<8x128xf32>
      %c0_10 = arith.constant 0 : index
      %c0_11 = arith.constant 0 : index
      %14 = vector.load %arg6[%c0_10, %c0_11] : memref<8x128xf32, #tpu.memory_space<vmem>>, vector<8x128xf32>
      tpu.vector_store %arg6[%c0_10, %c0_11], %13 {strides = array<i32>} : memref<8x128xf32, #tpu.memory_space<vmem>>, vector<8x128xf32>,
    } else {
    }
    %c0 = arith.constant 0 : index
    %c0_1 = arith.constant 0 : index
    %3 = vector.load %arg6[%c0, %c0_1] : memref<8x128xf32, #tpu.memory_space<vmem>>, vector<8x128xf32>
    %c0_2 = arith.constant 0 : index
    %c0_3 = arith.constant 0 : index
    %4 = vector.load %arg1[%c0_2, %c0_3] : memref<8x128xf32, #tpu.memory_space<vmem>>, vector<8x128xf32>
    %c0_4 = arith.constant 0 : index
    %c0_5 = arith.constant 0 : index
    %5 = vector.load %arg2[%c0_4, %c0_5] : memref<128x128xbf16, #tpu.memory_space<vmem>>, vector<128x128xbf16>
    %6 = arith.extf %5 : vector<128x128xbf16> to vector<128x128xf32>
    %cst = arith.constant dense<0.000000e+00> : vector<8x128xf32>
    %7 = tpu.matmul %4, %6, %cst {dimension_numbers = #tpu.dot_dimension_numbers<[1], [0], [0], [1], [0, 0, 1, 1], [], []>} : vector<8x128xf32>, vector<128x128xf32>, vector<8x128xf32> -> vector<8x128xf32>
    %8 = arith.addf %3, %7 : vector<8x128xf32>
    %c0_6 = arith.constant 0 : index
    %c0_7 = arith.constant 0 : index
    %9 = vector.load %arg6[%c0_6, %c0_7] : memref<8x128xf32, #tpu.memory_space<vmem>>, vector<8x128xf32>
    tpu.vector_store %arg6[%c0_6, %c0_7], %8 {strides = array<i32>} : memref<8x128xf32, #tpu.memory_space<vmem>>, vector<8x128xf32>,
    %c1_i32 = arith.constant 1 : i32
    %10 = arith.cmpi eq, %arg0, %c1_i32 : i32
    %11 = arith.extui %10 : i1 to i32
    %c0_i32_8 = arith.constant 0 : i32
    %12 = arith.cmpi ne, %11, %c0_i32_8 : i32
    scf.if %12 {
      %c0_9 = arith.constant 0 : index
      %c0_10 = arith.constant 0 : index
      %13 = vector.load %arg6[%c0_9, %c0_10] : memref<8x128xf32, #tpu.memory_space<vmem>>, vector<8x128xf32>
      %c0_11 = arith.constant 0 : index
      %c0_12 = arith.constant 0 : index
      %14 = vector.load %arg3[%c0_11, %c0_12] : memref<128x128xf32, #tpu.memory_space<vmem>>, vector<128x128xf32>
      %cst_13 = arith.constant dense<0.000000e+00> : vector<8x128xf32>
      %15 = tpu.matmul %13, %14, %cst_13 {dimension_numbers = #tpu.dot_dimension_numbers<[1], [0], [0], [1], [0, 0, 1, 1], [], []>} : vector<8x128xf32>, vector<128x128xf32>, vector<8x128xf32> -> vector<8x128xf32>
      %c0_14 = arith.constant 0 : index
      %c0_15 = arith.constant 0 : index
      %16 = vector.load %arg4[%c0_14, %c0_15] : memref<1x128xf32, #tpu.memory_space<vmem>>, vector<1x128xf32>
      %17 = vector.broadcast %16 : vector<1x128xf32> to vector<8x128xf32>
      %18 = arith.addf %15, %17 : vector<8x128xf32>
      %c0_16 = arith.constant 0 : index
      %c0_17 = arith.constant 0 : index
      %19 = vector.load %arg5[%c0_16, %c0_17] : memref<8x128xf32, #tpu.memory_space<vmem>>, vector<8x128xf32>
      tpu.vector_store %arg5[%c0_16, %c0_17], %18 {strides = array<i32>} : memref<8x128xf32, #tpu.memory_space<vmem>>, vector<8x128xf32>,
    } else {
    }
    return
  }
  func.func @transform_0(%arg0: i32) -> (i32, i32) {
    %c0_i32 = arith.constant 0 : i32
    %c0_i32_0 = arith.constant 0 : i32
    return %c0_i32, %arg0 : i32, i32
  }
  func.func @transform_1(%arg0: i32) -> (i32, i32) {
    %c0_i32 = arith.constant 0 : i32
    %c0_i32_0 = arith.constant 0 : i32
    return %arg0, %c0_i32 : i32, i32
  }
  func.func @transform_2(%arg0: i32) -> (i32, i32) {
    %c0_i32 = arith.constant 0 : i32
    %c0_i32_0 = arith.constant 0 : i32
    %c0_i32_1 = arith.constant 0 : i32
    return %c0_i32, %c0_i32_0 : i32, i32
  }
  func.func @transform_3(%arg0: i32) -> (i32, i32) {
    %c0_i32 = arith.constant 0 : i32
    %c0_i32_0 = arith.constant 0 : i32
    %c0_i32_1 = arith.constant 0 : i32
    return %c0_i32, %c0_i32_0 : i32, i32
  }
  func.func @transform_4(%arg0: i32) -> (i32, i32) {
    %c0_i32 = arith.constant 0 : i32
    %c0_i32_0 = arith.constant 0 : i32
    %c0_i32_1 = arith.constant 0 : i32
    return %c0_i32, %c0_i32_0 : i32, i32
  }
}

module attributes {stable_mosaic.version = 11 : i64} {
  func.func @gin_conv_kernel(%arg0: i32, %arg1: i32, %arg2: memref<128x128xbf16, #tpu.memory_space<vmem>>, %arg3: memref<128x128xbf16, #tpu.memory_space<vmem>>, %arg4: memref<128x128xf32, #tpu.memory_space<vmem>>, %arg5: memref<1x128xf32, #tpu.memory_space<vmem>>, %arg6: memref<128x128xf32, #tpu.memory_space<vmem>>, %arg7: memref<1x128xf32, #tpu.memory_space<vmem>>, %arg8: memref<128x128xbf16, #tpu.memory_space<vmem>>, %arg9: memref<128x128xf32, #tpu.memory_space<vmem>>) attributes {dimension_semantics = [#tpu.dimension_semantics<parallel>, #tpu.dimension_semantics<arbitrary>], iteration_bounds = array<i64: 2, 2>, scalar_prefetch = 0 : i64, scratch_operands = 1 : i64, tpu.core_type = #tpu.core_type<tc>, window_params = [{transform_indices = @transform_0, window_bounds = array<i64: 128, 128>}, {transform_indices = @transform_1, window_bounds = array<i64: 128, 128>}, {pipeline_mode = #tpu.pipeline_mode<synchronous>, transform_indices = @transform_2, window_bounds = array<i64: 128, 128>}, {pipeline_mode = #tpu.pipeline_mode<synchronous>, transform_indices = @transform_3, window_bounds = array<i64: 1, 128>}, {pipeline_mode = #tpu.pipeline_mode<synchronous>, transform_indices = @transform_4, window_bounds = array<i64: 128, 128>}, {pipeline_mode = #tpu.pipeline_mode<synchronous>, transform_indices = @transform_5, window_bounds = array<i64: 1, 128>}, {transform_indices = @transform_6, window_bounds = array<i64: 128, 128>}]} {
    %c0_i32 = arith.constant 0 : i32
    %0 = arith.cmpi eq, %arg1, %c0_i32 : i32
    %1 = arith.extui %0 : i1 to i32
    %c0_i32_0 = arith.constant 0 : i32
    %2 = arith.cmpi ne, %1, %c0_i32_0 : i32
    scf.if %2 {
      %cst_9 = arith.constant 0.000000e+00 : f32
      %12 = vector.broadcast %cst_9 : f32 to vector<128x128xf32>
      %c0_10 = arith.constant 0 : index
      %c0_11 = arith.constant 0 : index
      %13 = vector.load %arg9[%c0_10, %c0_11] : memref<128x128xf32, #tpu.memory_space<vmem>>, vector<128x128xf32>
      tpu.vector_store %arg9[%c0_10, %c0_11], %12 {strides = array<i32>} : memref<128x128xf32, #tpu.memory_space<vmem>>, vector<128x128xf32>,
    } else {
    }
    %c0 = arith.constant 0 : index
    %c0_1 = arith.constant 0 : index
    %3 = vector.load %arg9[%c0, %c0_1] : memref<128x128xf32, #tpu.memory_space<vmem>>, vector<128x128xf32>
    %c0_2 = arith.constant 0 : index
    %c0_3 = arith.constant 0 : index
    %4 = vector.load %arg2[%c0_2, %c0_3] : memref<128x128xbf16, #tpu.memory_space<vmem>>, vector<128x128xbf16>
    %c0_4 = arith.constant 0 : index
    %c0_5 = arith.constant 0 : index
    %5 = vector.load %arg3[%c0_4, %c0_5] : memref<128x128xbf16, #tpu.memory_space<vmem>>, vector<128x128xbf16>
    %cst = arith.constant dense<0.000000e+00> : vector<128x128xf32>
    %6 = tpu.matmul %4, %5, %cst {dimension_numbers = #tpu.dot_dimension_numbers<[1], [0], [0], [1], [0, 0, 1, 1], [], []>} : vector<128x128xbf16>, vector<128x128xbf16>, vector<128x128xf32> -> vector<128x128xf32>
    %7 = arith.addf %3, %6 : vector<128x128xf32>
    %c0_6 = arith.constant 0 : index
    %c0_7 = arith.constant 0 : index
    %8 = vector.load %arg9[%c0_6, %c0_7] : memref<128x128xf32, #tpu.memory_space<vmem>>, vector<128x128xf32>
    tpu.vector_store %arg9[%c0_6, %c0_7], %7 {strides = array<i32>} : memref<128x128xf32, #tpu.memory_space<vmem>>, vector<128x128xf32>,
    %c1_i32 = arith.constant 1 : i32
    %9 = arith.cmpi eq, %arg1, %c1_i32 : i32
    %10 = arith.extui %9 : i1 to i32
    %c0_i32_8 = arith.constant 0 : i32
    %11 = arith.cmpi ne, %10, %c0_i32_8 : i32
    scf.if %11 {
      %c0_9 = arith.constant 0 : index
      %c0_10 = arith.constant 0 : index
      %12 = vector.load %arg9[%c0_9, %c0_10] : memref<128x128xf32, #tpu.memory_space<vmem>>, vector<128x128xf32>
      %c0_11 = arith.constant 0 : index
      %c0_12 = arith.constant 0 : index
      %13 = vector.load %arg4[%c0_11, %c0_12] : memref<128x128xf32, #tpu.memory_space<vmem>>, vector<128x128xf32>
      %cst_13 = arith.constant dense<0.000000e+00> : vector<128x128xf32>
      %14 = tpu.matmul %12, %13, %cst_13 {dimension_numbers = #tpu.dot_dimension_numbers<[1], [0], [0], [1], [0, 0, 1, 1], [], []>} : vector<128x128xf32>, vector<128x128xf32>, vector<128x128xf32> -> vector<128x128xf32>
      %c0_14 = arith.constant 0 : index
      %c0_15 = arith.constant 0 : index
      %15 = vector.load %arg5[%c0_14, %c0_15] : memref<1x128xf32, #tpu.memory_space<vmem>>, vector<1x128xf32>
      %16 = vector.broadcast %15 : vector<1x128xf32> to vector<128x128xf32>
      %17 = arith.addf %14, %16 : vector<128x128xf32>
      %cst_16 = arith.constant 0.000000e+00 : f32
      %18 = vector.broadcast %cst_16 : f32 to vector<128x128xf32>
      %19 = arith.maximumf %17, %18 : vector<128x128xf32>
      %c0_17 = arith.constant 0 : index
      %c0_18 = arith.constant 0 : index
      %20 = vector.load %arg6[%c0_17, %c0_18] : memref<128x128xf32, #tpu.memory_space<vmem>>, vector<128x128xf32>
      %cst_19 = arith.constant dense<0.000000e+00> : vector<128x128xf32>
      %21 = tpu.matmul %19, %20, %cst_19 {dimension_numbers = #tpu.dot_dimension_numbers<[1], [0], [0], [1], [0, 0, 1, 1], [], []>} : vector<128x128xf32>, vector<128x128xf32>, vector<128x128xf32> -> vector<128x128xf32>
      %c0_20 = arith.constant 0 : index
      %c0_21 = arith.constant 0 : index
      %22 = vector.load %arg7[%c0_20, %c0_21] : memref<1x128xf32, #tpu.memory_space<vmem>>, vector<1x128xf32>
      %23 = vector.broadcast %22 : vector<1x128xf32> to vector<128x128xf32>
      %24 = arith.addf %21, %23 : vector<128x128xf32>
      %cst_22 = arith.constant 0.000000e+00 : f32
      %25 = vector.broadcast %cst_22 : f32 to vector<128x128xf32>
      %26 = arith.maximumf %24, %25 : vector<128x128xf32>
      %27 = arith.truncf %26 : vector<128x128xf32> to vector<128x128xbf16>
      %c0_23 = arith.constant 0 : index
      %c0_24 = arith.constant 0 : index
      %28 = vector.load %arg8[%c0_23, %c0_24] : memref<128x128xbf16, #tpu.memory_space<vmem>>, vector<128x128xbf16>
      tpu.vector_store %arg8[%c0_23, %c0_24], %27 {strides = array<i32>} : memref<128x128xbf16, #tpu.memory_space<vmem>>, vector<128x128xbf16>,
    } else {
    }
    return
  }
  func.func @transform_0(%arg0: i32, %arg1: i32) -> (i32, i32) {
    %c0_i32 = arith.constant 0 : i32
    return %arg0, %arg1 : i32, i32
  }
  func.func @transform_1(%arg0: i32, %arg1: i32) -> (i32, i32) {
    %c0_i32 = arith.constant 0 : i32
    %c0_i32_0 = arith.constant 0 : i32
    return %arg1, %c0_i32 : i32, i32
  }
  func.func @transform_2(%arg0: i32, %arg1: i32) -> (i32, i32) {
    %c0_i32 = arith.constant 0 : i32
    %c0_i32_0 = arith.constant 0 : i32
    %c0_i32_1 = arith.constant 0 : i32
    return %c0_i32, %c0_i32_0 : i32, i32
  }
  func.func @transform_3(%arg0: i32, %arg1: i32) -> (i32, i32) {
    %c0_i32 = arith.constant 0 : i32
    %c0_i32_0 = arith.constant 0 : i32
    %c0_i32_1 = arith.constant 0 : i32
    return %c0_i32, %c0_i32_0 : i32, i32
  }
  func.func @transform_4(%arg0: i32, %arg1: i32) -> (i32, i32) {
    %c0_i32 = arith.constant 0 : i32
    %c0_i32_0 = arith.constant 0 : i32
    %c0_i32_1 = arith.constant 0 : i32
    return %c0_i32, %c0_i32_0 : i32, i32
  }
  func.func @transform_5(%arg0: i32, %arg1: i32) -> (i32, i32) {
    %c0_i32 = arith.constant 0 : i32
    %c0_i32_0 = arith.constant 0 : i32
    %c0_i32_1 = arith.constant 0 : i32
    return %c0_i32, %c0_i32_0 : i32, i32
  }
  func.func @transform_6(%arg0: i32, %arg1: i32) -> (i32, i32) {
    %c0_i32 = arith.constant 0 : i32
    %c0_i32_0 = arith.constant 0 : i32
    return %arg0, %c0_i32 : i32, i32
  }
}

</mosaic_0001>

<bundles_post_ra>
// kernel: gin_forward.7
= control target key start
LH: loop header
LB: loop body
LE: loop exit
PB: predicated region body
PF: predicated region fallthrough
CT: control target
= control target key end

     0   :  { %9 = vsyncpa [#allocation4], 0  ;;  %s1077_s0 = inlined_call_operand.vmem [shape: f32[8,256], index: 0, kind: input, shape index: {}]   ;;  %s1078_s1 = inlined_call_operand.hbm [shape: bf16[256,128], index: 1, kind: input, shape index: {}]   ;;  %s1079_s2 = inlined_call_operand.hbm [shape: f32[128,128], index: 2, kind: input, shape index: {}]   ;;  %s1080_s3 = inlined_call_operand.vmem [shape: f32[1,128], index: 3, kind: input, shape index: {}]   ;;  %s1081_s4 = inlined_call_operand.vmem [shape: f32[8,128], index: 4, kind: output, shape index: {}]  }
   0x1   :  { %11 = vsyncpa [#allocation4 + $0x1], 0 }
   0x2   :  { %12 = vsyncpa [#allocation6], 0  ;;  %s912_s15 = smov 0   ;;  %s914_s16 = smov 0  }
   0x3   :  { %s916_s17 = smov 0   ;;  %s918_s18 = smov 0  }
   0x4 LB: > { %s931_s19 = sadd.s32 4294967295, %s872_s18   ;;  %p64_p0 = scmp.ne.s32.totalorder %s864_s16, %s860_s15  ;;  %s872_s18 = sphi %s918_s18, %s1097_s18   ;;  %s868_s17 = sphi %s916_s17, %s1096_s17   ;;  %s864_s16 = sphi %s914_s16, %s1095_s16   ;;  %s860_s15 = sphi %s912_s15, %s1094_s15  }
   0x5   : > { %p1082_p1 = scmp.eq.s32.totalorder %s931_s19, 0  ;;  %p508_p2 = scmp.ge.s32.totalorder %s872_s18, 1 }
   0x6   : > { %p138_p3 = scmp.lt.s32.totalorder %s872_s18, 3  ;;  %s874_s22 = smov [#allocation5]  }
   0x7   : > { %p940_p5 = por %p1082_p1, %p64_p0  ;;  %s150_s23 = sshll.u32 %s874_s22, 4  ;;  %s151_s23 = int_to_ptr.vmem [resolvable:$true] %s150_s23 }
   0x8   : > { %p944_p6 = pnand %p508_p2, %p138_p3  ;;  %s957_s25 = sadd.s32 1, %s872_s18  }
   0x9   : > { %s1085_s20 = scalar_select %p940_p5, 1, 0 }
   0xa   : > { %s1086_s21 = scalar_select %p944_p6, 1, 0 }
   0xb   : > { %p721_p7 = pneg %p944_p6  ;;  %s51_s26 = sadd.s32 1, %s868_s17 }
   0xc   : > { %s48_s27 = ssub.s32 %s872_s18, %s957_s25  ;;  %s776_s30 = scalar_lea.hbm %s1079_s2, 2048 }
   0xd   : > { %p952_p8 = pnand %p721_p7, %p1082_p1  ;;  %p777_p9 = scmp.ne.s32.totalorder %s1079_s2, %s776_s30 }
   0xe   : > { %p783_p13 = scmp.lt.u32.totalorder %s776_s30, %s1079_s2 }
   0xf   : > { %p778_p10 = pneg %p952_p8 }
  0x11   : > { %p779_p11 = pnand %p778_p10, %p777_p9 }
  0x13   : > { %p780_p12 = pneg %p779_p11 }
  0x15   : > { %p785_p0 = pnand %p783_p13, %p780_p12 }
  0x17   : > { %788 = shalt.err (!%p785_p0)
}
  0x18   : > { %s789_s9 = scalar_lea.vmem %s151_s23, 2048  ;;  %p797_p4 = scmp.lt.s32.totalorder %s151_s23, %s151_s23 }
  0x19   : > { %p790_p2 = scmp.ne.s32.totalorder %s151_s23, %s789_s9  ;;  %p798_p1 = scmp.lt.s32.totalorder %s789_s9, %s789_s9 }
  0x1b   : > { %p792_p3 = pnand %p790_p2, %p778_p10  ;;  %p799_p5 = por %p798_p1, %p797_p4 }
  0x1d   : > { %p793_p7 = pneg %p792_p3 }
  0x1f   : > { %p800_p6 = pnand %p799_p5, %p793_p7 }
  0x21   : > { %803 = shalt.err (!%p800_p6)
}
  0x22   : > { %s875_s10 = smov 128   ;;  %s876_s11 = smov 8  }
  0x23   : > { %724 = dma.hbm_to_vmem [thread:$0]  (!%p952_p8), %s1079_s2, 2048, %s151_s23, [#allocation6], %s875_s10, %s875_s10, %s876_s11  }
  0x24   : > { %p49_p9 = scmp.eq.s32.totalorder %s48_s27, 0  ;;  %p58_p10 = scmp.ne.s32.totalorder %s868_s17, %s864_s16 }
  0x25   : > { %p59_p1 = scmp.eq.s32.totalorder %s872_s18, 0  ;;  %p730_p4 = scmp.lt.s32.totalorder %s872_s18, 2 }
  0x26   : > { %s983_s14 = scalar_select %p49_p9, %s868_s17, %s51_s26  }
  0x27   : > { %p60_p5 = por %p59_p1, %p58_p10  ;;  %s174_s15 = sand.u32 1, %s868_s17  }
  0x28   : > { %s511_s22 = sshll.u32 %s174_s15, 6  ;;  %s523_s28 = sshll.u32 %s872_s18, 10 }
  0x29   : > { %s990_s5 = scalar_lea.hbm %s1078_s1, %s523_s28  ;;  %s178_s23 = scalar_lea.vmem [#allocation3], %s511_s22 }
  0x2a   : > { %s185_s24 = sshll.u32 %s178_s23, 4  ;;  %p994_p6 = pnand %p730_p4, %p60_p5  ;;  %s992_s24 = int_to_ptr.vmem [resolvable:$true] %s185_s24 }
  0x2b   : > { %s998_s18 = scalar_lea.sflag [#allocation4], %s174_s15  ;;  %s804_s27 = scalar_lea.hbm %s990_s5, 1024 }
  0x2c   : > { %p805_p8 = scmp.ne.s32.totalorder %s990_s5, %s804_s27  ;;  %p806_p11 = pneg %p994_p6 }
  0x2d   : > { %s809_s8 = scalar_lea.hbm %s1078_s1, 2048  ;;  %p810_p0 = scmp.lt.u32.totalorder %s990_s5, %s1078_s1 }
  0x2e   : > { %p807_p12 = pnand %p806_p11, %p805_p8  ;;  %p811_p2 = scmp.lt.u32.totalorder %s809_s8, %s804_s27 }
  0x2f   : > { %p813_p7 = scmp.lt.u32.totalorder %s804_s27, %s990_s5 }
  0x30   : > { %p808_p13 = pneg %p807_p12  ;;  %p812_p3 = por %p811_p2, %p810_p0 }
  0x32   : > { %p814_p9 = por %p813_p7, %p812_p3 }
  0x34   : > { %p815_p10 = pnand %p814_p9, %p808_p13 }
  0x36   : > { %818 = shalt.err (!%p815_p10)
}
  0x37   : > { %s819_s11 = scalar_lea.vmem %s992_s24, 1024  ;;  %s877_s12 = smov [#allocation3]  }
  0x38   : > { %p820_p1 = scmp.ne.s32.totalorder %s992_s24, %s819_s11  ;;  %s824_s13 = sshll.u32 %s877_s12, 4  ;;  %s825_s13 = int_to_ptr.vmem [resolvable:$false] %s824_s13 }
  0x39   : > { %s826_s15 = scalar_lea.vmem %s825_s13, 2048  ;;  %p827_p8 = scmp.lt.s32.totalorder %s992_s24, %s825_s13 }
  0x3a   : > { %p822_p4 = pnand %p820_p1, %p806_p11  ;;  %p828_p12 = scmp.lt.s32.totalorder %s826_s15, %s819_s11 }
  0x3c   : > { %p823_p5 = pneg %p822_p4  ;;  %p829_p0 = por %p828_p12, %p827_p8 }
  0x3e   : > { %p830_p2 = pnand %p829_p0, %p823_p5 }
  0x40   : > { %833 = shalt.err (!%p830_p2)
}
  0x41   : > { %s878_s22 = smov 64   ;;  %s879_s28 = smov 4  }
  0x42   : > { %728 = dma.hbm_to_vmem [thread:$0]  (!%p994_p6), %s990_s5, 1024, %s992_s24, %s998_s18, %s878_s22, %s878_s22, %s879_s28  }
  0x43   : > { %p1089_p11 = scmp.ne.s32.totalorder %s1086_s21, 0 }
  0x44   : > { %s199_s29 = sand.u32 (!%p1089_p11), 1, %s864_s16   ;;  %p1090_p13 = scmp.ne.s32.totalorder (!%p1089_p11), %s1085_s20, 0 }
  0x45   : > { %197 = sbr.rel (%p1089_p11) target bundleno = 560 (0x230), region = 36  ;;  %s515_s30 = sshll.u32 (!%p1089_p11), %s199_s29, 6 }
  0x46   : > { %s200_s23 = scalar_lea.sflag (!%p1089_p11), [#allocation4], %s199_s29  ;;  %s1029_s27 = scalar_lea.vmem (!%p1089_p11), [#allocation3], %s515_s30 }
  0x4c   : > { %851 = dma.done.wait (%p1090_p13), %s200_s23, 1024  }
  0x4d   : > { %853 = vsyncadd (%p1090_p13), %s200_s23, 4294966272  ;;  %p1091_p3 = scmp.eq.s32.totalorder %s931_s19, 0 }
  0x4f   : > { %855 = dma.done.wait (%p1091_p3), [#allocation6], 2048   ;;  %p1092_p6 = pmov %p1091_p3 }
  0x50   : > { %p231_p7 = scmp.lt.s32.totalorder %s931_s19, 1  ;;  %p1093_p9 = scmp.ne.s32.totalorder %s931_s19, 0 }
  0x51   : > { %857 = vsyncadd (%p1092_p6), [#allocation6], 4294965248  ;;  %v880_v0 = vmov (!%p1093_p9), 0.0  }
  0x52   : > { %s232_s21 = scalar_select %p231_p7, %s931_s19, 1 }
  0x53   : > { %239 = sbr.rel (%p1093_p9) target bundleno = 90 (0x5a), region = 48  ;;  %240 = vst [vmem:[#allocation2] sm:$0xff] (!%p1093_p9), %v880_v0 }
  0x54   : > { %s517_s5 = sshll.u32 %s232_s21, 3 }
  0x55   : > { %s1044_s18 = scalar_lea.vmem %s1077_s0, %s517_s5 }
  0x5a PF: > { %v525_v1 = vld [vmem:[%s1029_s27] sm:$0xff]   ;;  %v881_v2 = vmov 0.0|0.0   ;;  %vm882_vm0 = vmmov 0   ;;  %v883_v3 = vmov 0.0   ;;  %v556_v4 = vld [vmem:[%s1029_s27 + $0x8] sm:$0xff]   ;;  %v557_v5 = vld [vmem:[%s1029_s27 + $0x10] sm:$0xff]  }
  0x5b   : > { %667 = vmatprep.subr.bf16.mxu0 %v881_v2  ;;  %629 = vmatprep.mubr.msk.f32.mxu0 %vm882_vm0, %v883_v3  ;;  %v558_v6 = vld [vmem:[%s1029_s27 + $0x18] sm:$0xff]   ;;  %v559_v7 = vld [vmem:[%s1029_s27 + $0x20] sm:$0xff]   ;;  %v560_v8 = vld [vmem:[%s1029_s27 + $0x28] sm:$0xff]   ;;  %p519_p10 = scmp.ne.s32.totalorder %s931_s19, 1 }
  0x5c   : > { %669 = vmatpush3.bf16.msra.mxu0 %v525_v1  ;;  %v561_v9 = vld [vmem:[%s1029_s27 + $0x30] sm:$0xff]   ;;  %v562_v10 = vld [vmem:[%s1029_s27 + $0x38] sm:$0xff]   ;;  %v352_v16 = vld [vmem:[#allocation5] sm:$0xff] (!%p519_p10)  ;;  %v884_v19 = vmov (!%p519_p10), 0.0|0.0   ;;  %vm885_vm1 = vmmov (!%p519_p10), 0   ;;  %v886_v22 = vmov (!%p519_p10), 0.0  }
  0x5d   : > { %670 = vmatprep.subr.bf16.mxu0 %v881_v2  ;;  %v242_v11 = vld [vmem:[%s1044_s18] sm:$0xff]  ;;  %v353_v17 = vld [vmem:[#allocation5 + $0x8] sm:$0xff] (!%p519_p10)  ;;  %v354_v18 = vld [vmem:[#allocation5 + $0x10] sm:$0xff] (!%p519_p10) }
  0x5e   : > { %v241_v12 = vld [vmem:[#allocation2] sm:$0xff]  ;;  %v692_v20 = vpack.c.bf16 (!%p519_p10), %v353_v17, %v352_v16  ;;  %v356_v24 = vld [vmem:[#allocation5 + $0x20] sm:$0xff] (!%p519_p10)  ;;  %v357_v25 = vld [vmem:[#allocation5 + $0x28] sm:$0xff] (!%p519_p10) }
  0x5f   : > { %v355_v21 = vld [vmem:[#allocation5 + $0x18] sm:$0xff] (!%p519_p10)  ;;  %v698_v26 = vpack.c.bf16 (!%p519_p10), %v357_v25, %v356_v24  ;;  %v358_v27 = vld [vmem:[#allocation5 + $0x30] sm:$0xff] (!%p519_p10)  ;;  %v360_v30 = vld [vmem:[#allocation5 + $0x40] sm:$0xff] (!%p519_p10) }
  0x60   : > { %672 = vmatpush3.bf16.msra.mxu0 %v556_v4  ;;  %v695_v23 = vpack.c.bf16 (!%p519_p10), %v355_v21, %v354_v18  ;;  %v359_v28 = vld [vmem:[#allocation5 + $0x38] sm:$0xff] (!%p519_p10)  ;;  %v361_v31 = vld [vmem:[#allocation5 + $0x48] sm:$0xff] (!%p519_p10)  ;;  %v362_v33 = vld [vmem:[#allocation5 + $0x50] sm:$0xff] (!%p519_p10) }
  0x61   : > { %673 = vmatprep.subr.bf16.mxu0 %v881_v2  ;;  %v701_v29 = vpack.c.bf16 (!%p519_p10), %v359_v28, %v358_v27  ;;  %v704_v32 = vpack.c.bf16 (!%p519_p10), %v361_v31, %v360_v30  ;;  %v363_v34 = vld [vmem:[#allocation5 + $0x58] sm:$0xff] (!%p519_p10)  ;;  %v364_v36 = vld [vmem:[#allocation5 + $0x60] sm:$0xff] (!%p519_p10)  ;;  %v365_v37 = vld [vmem:[#allocation5 + $0x68] sm:$0xff] (!%p519_p10) }
  0x62   : > { %v707_v35 = vpack.c.bf16 (!%p519_p10), %v363_v34, %v362_v33  ;;  %v710_v38 = vpack.c.bf16 (!%p519_p10), %v365_v37, %v364_v36  ;;  %v366_v39 = vld [vmem:[#allocation5 + $0x70] sm:$0xff] (!%p519_p10)  ;;  %v367_v40 = vld [vmem:[#allocation5 + $0x78] sm:$0xff] (!%p519_p10) }
  0x63   : > { %v713_v41 = vpack.c.bf16 (!%p519_p10), %v367_v40, %v366_v39  ;;  %v520_v43 = vld [vmem:[%s1080_s3] ss:$0 sm:$0xff] (!%p519_p10) }
  0x64   : > { %675 = vmatpush3.bf16.msra.mxu0 %v557_v5 }
  0x65   : > { %676 = vmatprep.subr.bf16.mxu0 %v881_v2 }
  0x68   : > { %678 = vmatpush3.bf16.msra.mxu0 %v558_v6 }
  0x69   : > { %679 = vmatprep.subr.bf16.mxu0 %v881_v2 }
  0x6c   : > { %681 = vmatpush3.bf16.msra.mxu0 %v559_v7 }
  0x6d   : > { %682 = vmatprep.subr.bf16.mxu0 %v881_v2 }
  0x70   : > { %684 = vmatpush3.bf16.msra.mxu0 %v560_v8 }
  0x71   : > { %685 = vmatprep.subr.bf16.mxu0 %v881_v2 }
  0x74   : > { %687 = vmatpush3.bf16.msra.mxu0 %v561_v9 }
  0x75   : > { %688 = vmatprep.subr.bf16.mxu0 %v881_v2 }
  0x78   : > { %690 = vmatpush3.bf16.msra.mxu0 %v562_v10 }
  0x79   : > { %691 = vmatprep.subr.bf16.mxu0 (!%p519_p10), %v884_v19 }
  0x7b   : > { %630 = vmatmul.mubr.f32.vlgmr.msra.gmra.mrb[0].mxu0 %v242_v11 }
  0x7c   : > { %664 = vmatprep.mubr.msk.f32.mxu0 (!%p519_p10), %vm885_vm1, %v886_v22  ;;  %693 = vmatpush3.bf16.msra.mxu0 (!%p519_p10), %v692_v20 }
  0x7d   : > { %694 = vmatprep.subr.bf16.mxu0 (!%p519_p10), %v884_v19 }
  0x80   : > { %696 = vmatpush3.bf16.msra.mxu0 (!%p519_p10), %v695_v23 }
  0x81   : > { %697 = vmatprep.subr.bf16.mxu0 (!%p519_p10), %v884_v19 }
  0x84   : > { %699 = vmatpush3.bf16.msra.mxu0 (!%p519_p10), %v698_v26 }
  0x85   : > { %700 = vmatprep.subr.bf16.mxu0 (!%p519_p10), %v884_v19 }
  0x88   : > { %702 = vmatpush3.bf16.msra.mxu0 (!%p519_p10), %v701_v29 }
  0x89   : > { %703 = vmatprep.subr.bf16.mxu0 (!%p519_p10), %v884_v19 }
  0x8c   : > { %705 = vmatpush3.bf16.msra.mxu0 (!%p519_p10), %v704_v32 }
  0x8d   : > { %706 = vmatprep.subr.bf16.mxu0 (!%p519_p10), %v884_v19 }
  0x90   : > { %708 = vmatpush3.bf16.msra.mxu0 (!%p519_p10), %v707_v35 }
  0x91   : > { %709 = vmatprep.subr.bf16.mxu0 (!%p519_p10), %v884_v19 }
  0x94   : > { %711 = vmatpush3.bf16.msra.mxu0 (!%p519_p10), %v710_v38 }
  0x95   : > { %712 = vmatprep.subr.bf16.mxu0 (!%p519_p10), %v884_v19 }
  0x98   : > { %714 = vmatpush3.bf16.msra.mxu0 (!%p519_p10), %v713_v41 }
 0x14b   : > { %350 = sbr.rel (%p519_p10) target bundleno = 560 (0x230), region = 52 }
 0x14e   : > { %v341_v13 = vpop.f32.mrb[0].mxu0 }
 0x14f   : > { %v345_v14 = vadd.f32 %v341_v13, %v241_v12  ;;  %v631_v15 = vpop.f32.mrb[1].mxu0 }
 0x151   : > { %346 = vst [vmem:[#allocation2] sm:$0xff] %v345_v14 }
 0x158   : > { %v351_v42 = vld [vmem:[#allocation2] sm:$0xff] }
 0x159   : > { %665 = vmatmul.mubr.f32.vlgmr.msra.gmra.mrb[0].mxu0 %v351_v42 }
 0x22c   : > { %v441_v44 = vpop.f32.mrb[0].mxu0 }
 0x22d   : > { %v442_v45 = vadd.f32 %v520_v43, %v441_v44  ;;  %v666_v46 = vpop.f32.mrb[1].mxu0 }
 0x22f   : > { %445 = vst [vmem:[%s1081_s4] sm:$0xff] %v442_v45 }
 0x230 PF: > { %p15_p1 = scmp.ge.s32.totalorder %s957_s25, 4   ;;  %s1094_s15 = smov %s864_s16 }
 0x231   : > { %s1095_s16 = smov %s868_s17  ;;  %s1096_s17 = smov %s983_s14 }
 0x232   : > { %s1097_s18 = smov %s957_s25  ;;  %17 = sbr.rel (!%p15_p1) target bundleno = 4 (0x4), region = 87 }
 0x239   :  { %457 = vsyncpa [#allocation4], 1 }
 0x23a   :  { %459 = vsyncpa [#allocation4 + $0x1], 1 }
 0x23b   :  { %460 = vsyncpa [#allocation6], 1 }

// kernel: gin_forward.4
= control target key start
LH: loop header
LB: loop body
LE: loop exit
PB: predicated region body
PF: predicated region fallthrough
CT: control target
= control target key end

     0   :  { %s2810_s0 = inlined_call_operand.hbm [shape: bf16[256,256], index: 0, kind: input, shape index: {}]   ;;  %s2811_s1 = inlined_call_operand.hbm [shape: bf16[256,128], index: 1, kind: input, shape index: {}]   ;;  %s2812_s2 = inlined_call_operand.hbm [shape: f32[128,128], index: 2, kind: input, shape index: {}]   ;;  %s2813_s3 = inlined_call_operand.hbm [shape: f32[1,128], index: 3, kind: input, shape index: {}]   ;;  %s2814_s4 = inlined_call_operand.hbm [shape: f32[128,128], index: 4, kind: input, shape index: {}]   ;;  %s2815_s5 = inlined_call_operand.hbm [shape: f32[1,128], index: 5, kind: input, shape index: {}]   ;;  %s2816_s6 = inlined_call_operand.hbm [shape: bf16[256,128], index: 6, kind: output, shape index: {}]  }
   0x1   :  { %2841 = sst [smem:[#allocation31_spill]] %s2812_s2 }
   0x2   :  { %2842 = sst [smem:[#allocation32_spill]] %s2813_s3 }
   0x3   :  { %2843 = sst [smem:[#allocation33_spill]] %s2814_s4 }
   0x4   :  { %2844 = sst [smem:[#allocation34_spill]] %s2815_s5 }
   0x5   :  { %2845 = sst [smem:[#allocation35_spill]] %s2816_s6 }
   0x6   :  { %11 = vsyncpa [#allocation4], 0 }
   0x7   :  { %13 = vsyncpa [#allocation4 + $0x1], 0 }
   0x8   :  { %14 = vsyncpa [#allocation7], 0 }
   0x9   :  { %16 = vsyncpa [#allocation7 + $0x1], 0 }
   0xa   :  { %17 = vsyncpa [#allocation10], 0 }
   0xb   :  { %18 = vsyncpa [#allocation13], 0 }
   0xc   :  { %19 = vsyncpa [#allocation5], 0 }
   0xd   :  { %21 = vsyncpa [#allocation5 + $0x1], 0  ;;  %s2320_s21 = smov 0   ;;  %s2322_s22 = smov 0  }
   0xe   :  { %s2324_s23 = smov 0   ;;  %s2326_s24 = smov 0  }
   0xf   :  { %s2328_s25 = smov 0   ;;  %s2330_s26 = smov 0  }
  0x10   :  { %s2332_s27 = smov 0   ;;  %s2334_s28 = smov 0  }
  0x11   :  { %s2336_s29 = smov 0   ;;  %s2338_s30 = smov 0  }
  0x12   :  { %s2340_s7 = smov 0   ;;  %s2342_s8 = smov 0  }
  0x13   :  { %s2344_s9 = smov 0   ;;  %s2346_s10 = smov 0  }
  0x14 LB: > { %2846 = sst [smem:[#allocation21_spill]] %s2217_s21  ;;  %s2387_s11 = sadd.s32 4294967295, %s2269_s10   ;;  %s2269_s10 = sphi %s2346_s10, %s27_s10   ;;  %s2265_s9 = sphi %s2344_s9, %s2914_s9   ;;  %s2261_s8 = sphi %s2342_s8, %s2913_s8   ;;  %s2257_s7 = sphi %s2340_s7, %s2912_s7   ;;  %s2253_s30 = sphi %s2338_s30, %s2911_s30   ;;  %s2249_s29 = sphi %s2336_s29, %s2910_s29   ;;  %s2245_s28 = sphi %s2334_s28, %s2909_s28   ;;  %s2241_s27 = sphi %s2332_s27, %s2908_s27   ;;  %s2237_s26 = sphi %s2330_s26, %s2907_s26   ;;  %s2233_s25 = sphi %s2328_s25, %s2906_s25   ;;  %s2229_s24 = sphi %s2326_s24, %s2905_s24   ;;  %s2225_s23 = sphi %s2324_s23, %s2904_s23   ;;  %s2221_s22 = sphi %s2322_s22, %s2903_s22   ;;  %s2217_s21 = sphi %s2320_s21, %s2902_s21  }
  0x15   : > { %2847 = sst [smem:[#allocation22_spill]] %s2221_s22  ;;  %s1307_s12 = sadd.s32 4294967294, %s2269_s10  }
  0x16   : > { %2848 = sst [smem:[#allocation23_spill]] %s2253_s30  ;;  %p61_p0 = scmp.ne.s32.totalorder %s2245_s28, %s2241_s27 }
  0x17   : > { %2849 = sst [smem:[#allocation24_spill]] %s2257_s7  ;;  %p2822_p1 = scmp.eq.s32.totalorder %s2387_s11, 0 }
  0x18   : > { %2850 = sst [smem:[#allocation25_spill]] %s2387_s11  ;;  %p87_p2 = scmp.ne.s32.totalorder %s2233_s25, %s2229_s24 }
  0x19   : > { %p194_p3 = scmp.ne.s32.totalorder %s2225_s23, %s2221_s22  ;;  %p2397_p4 = por %p2822_p1, %p61_p0 }
  0x1a   : > { %p195_p5 = scmp.eq.s32.totalorder %s2387_s11, 3  ;;  %p2404_p6 = por %p87_p2, %p2822_p1 }
  0x1b   : > { %s2851_s13 = scalar_select %p2397_p4, 1, 0 }
  0x1c   : > { %s2853_s14 = scalar_select %p2404_p6, 1, 0 }
  0x1d   : > { %2852 = sst [smem:[#allocation26_spill]] %s2851_s13  ;;  %p200_p7 = scmp.ne.s32.totalorder %s2221_s22, %s2217_s21 }
  0x1e   : > { %2854 = sst [smem:[#allocation27_spill]] %s2853_s14  ;;  %p2410_p8 = por %p195_p5, %p194_p3 }
  0x1f   : > { %p201_p9 = scmp.eq.s32.totalorder %s1307_s12, 3  ;;  %p1308_p10 = scmp.ge.s32.totalorder %s2269_s10, 1 }
  0x20   : > { %s2855_s15 = scalar_select %p2410_p8, 1, 0 }
  0x21   : > { %p208_p11 = scmp.lt.s32.totalorder %s2269_s10, 5  ;;  %p2416_p12 = por %p201_p9, %p200_p7 }
  0x22   : > { %2856 = sst [smem:[#allocation28_spill]] %s2855_s15  ;;  %s2271_s18 = smov [#allocation8]  }
  0x23   : > { %s2857_s16 = scalar_select %p2416_p12, 1, 0 }
  0x24   : > { %p2420_p13 = pnand %p1308_p10, %p208_p11  ;;  %s220_s19 = sshll.u32 %s2271_s18, 4  ;;  %s221_s19 = int_to_ptr.vmem [resolvable:$true] %s220_s19 }
  0x25   : > { %2858 = sst [smem:[#allocation29_spill]] %s2857_s16  ;;  %s2272_s24 = smov [#allocation9]  }
  0x26   : > { %s2859_s17 = scalar_select %p2420_p13, 1, 0 }
  0x27   : > { %p1762_p0 = pneg %p2420_p13  ;;  %s234_s27 = sshll.u32 %s2272_s24, 4  ;;  %s2432_s27 = int_to_ptr.vmem [resolvable:$true] %s234_s27 }
  0x28   : > { %s2861_s2 = sld [smem:[#allocation31_spill]] }
  0x29   : > { %p2428_p2 = pnand %p1762_p0, %p2822_p1 }
  0x2b   : > { %p2442_p5 = pneg %p2428_p2 }
  0x2e   : > { %s1935_s21 = scalar_lea.hbm %s2861_s2, 2048 }
  0x2f   : > { %p1936_p3 = scmp.ne.s32.totalorder %s2861_s2, %s1935_s21  ;;  %p1942_p10 = scmp.lt.u32.totalorder %s1935_s21, %s2861_s2 }
  0x31   : > { %p1938_p7 = pnand %p2442_p5, %p1936_p3 }
  0x33   : > { %p1939_p9 = pneg %p1938_p7 }
  0x35   : > { %p1944_p11 = pnand %p1942_p10, %p1939_p9 }
  0x37   : > { %1947 = shalt.err (!%p1944_p11)
}
  0x38   : > { %s1948_s16 = scalar_lea.vmem %s221_s19, 2048  ;;  %p1956_p8 = scmp.lt.s32.totalorder %s221_s19, %s221_s19 }
  0x39   : > { %p1949_p0 = scmp.ne.s32.totalorder %s221_s19, %s1948_s16  ;;  %p1957_p6 = scmp.lt.s32.totalorder %s1948_s16, %s1948_s16 }
  0x3b   : > { %p1951_p1 = pnand %p1949_p0, %p2442_p5  ;;  %p1958_p4 = por %p1957_p6, %p1956_p8 }
  0x3d   : > { %p1952_p12 = pneg %p1951_p1 }
  0x3f   : > { %p1959_p13 = pnand %p1958_p4, %p1952_p12 }
  0x41   : > { %1962 = shalt.err (!%p1959_p13)
}
  0x42   : > { %s2833_s6 = smov 128   ;;  %s2835_s15 = smov 8  }
  0x43   : > { %1765 = dma.hbm_to_vmem [thread:$0]  (!%p2428_p2), %s2861_s2, 2048, %s221_s19, [#allocation7], %s2833_s6, %s2833_s6, %s2835_s15  }
  0x44   : > { %s2863_s3 = sld [smem:[#allocation32_spill]] }
  0x4a   : > { %s1963_s30 = scalar_lea.hbm %s2863_s3, 16 }
  0x4b   : > { %p1964_p1 = scmp.ne.s32.totalorder %s2863_s3, %s1963_s30  ;;  %p1970_p8 = scmp.lt.u32.totalorder %s1963_s30, %s2863_s3 }
  0x4d   : > { %p1966_p4 = pnand %p1964_p1, %p2442_p5 }
  0x4f   : > { %p1967_p6 = pneg %p1966_p4 }
  0x51   : > { %p1972_p12 = pnand %p1970_p8, %p1967_p6 }
  0x53   : > { %1975 = shalt.err (!%p1972_p12)
}
  0x54   : > { %s1976_s19 = scalar_lea.vmem %s2432_s27, 16  ;;  %s1983_s22 = scalar_lea.vmem %s2432_s27, 32 }
  0x55   : > { %p1977_p13 = scmp.ne.s32.totalorder %s2432_s27, %s1976_s19  ;;  %p1984_p9 = scmp.lt.s32.totalorder %s2432_s27, %s2432_s27 }
  0x56   : > { %p1985_p10 = scmp.lt.s32.totalorder %s1983_s22, %s1976_s19 }
  0x57   : > { %p1979_p3 = pnand %p1977_p13, %p2442_p5 }
  0x58   : > { %p1986_p11 = por %p1985_p10, %p1984_p9 }
  0x59   : > { %p1980_p7 = pneg %p1979_p3 }
  0x5b   : > { %p1987_p0 = pnand %p1986_p11, %p1980_p7 }
  0x5d   : > { %1990 = shalt.err (!%p1987_p0)
}
  0x5e   : > { %1768 = dma.hbm_to_vmem [thread:$0]  (!%p2428_p2), %s2863_s3, 16, %s2432_s27, [#allocation10]  }
  0x5f   : > { %s2275_s14 = smov [#allocation11]   ;;  %s2276_s7 = smov [#allocation12]  }
  0x60   : > { %s244_s21 = sshll.u32 %s2275_s14, 4  ;;  %s258_s12 = sshll.u32 %s2276_s7, 4  ;;  %s245_s21 = int_to_ptr.vmem [resolvable:$true] %s244_s21  ;;  %s259_s12 = int_to_ptr.vmem [resolvable:$true] %s258_s12 }
  0x61   : > { %s2864_s4 = sld [smem:[#allocation33_spill]] }
  0x67   : > { %s1991_s19 = scalar_lea.hbm %s2864_s4, 2048 }
  0x68   : > { %p1992_p1 = scmp.ne.s32.totalorder %s2864_s4, %s1991_s19  ;;  %p1998_p8 = scmp.lt.u32.totalorder %s1991_s19, %s2864_s4 }
  0x6a   : > { %p1994_p4 = pnand %p1992_p1, %p2442_p5 }
  0x6c   : > { %p1995_p6 = pneg %p1994_p4 }
  0x6e   : > { %p2000_p12 = pnand %p1998_p8, %p1995_p6 }
  0x70   : > { %2003 = shalt.err (!%p2000_p12)
}
  0x71   : > { %s2004_s27 = scalar_lea.vmem %s245_s21, 2048  ;;  %p2012_p9 = scmp.lt.s32.totalorder %s245_s21, %s245_s21 }
  0x72   : > { %p2005_p13 = scmp.ne.s32.totalorder %s245_s21, %s2004_s27  ;;  %p2013_p10 = scmp.lt.s32.totalorder %s2004_s27, %s2004_s27 }
  0x74   : > { %p2007_p3 = pnand %p2005_p13, %p2442_p5  ;;  %p2014_p11 = por %p2013_p10, %p2012_p9 }
  0x76   : > { %p2008_p7 = pneg %p2007_p3 }
  0x78   : > { %p2015_p0 = pnand %p2014_p11, %p2008_p7 }
  0x7a   : > { %2018 = shalt.err (!%p2015_p0)
}
  0x7b   : > { %s2865_s6 = smov 8   ;;  %s2866_s11 = smov 128  }
  0x7c   : > { %1771 = dma.hbm_to_vmem [thread:$0]  (!%p2428_p2), %s2864_s4, 2048, %s245_s21, [#allocation10], %s2866_s11, %s2866_s11, %s2865_s6  }
  0x7d   : > { %s2867_s5 = sld [smem:[#allocation34_spill]] }
  0x83   : > { %s2019_s16 = scalar_lea.hbm %s2867_s5, 16 }
  0x84   : > { %p2020_p1 = scmp.ne.s32.totalorder %s2867_s5, %s2019_s16  ;;  %p2026_p8 = scmp.lt.u32.totalorder %s2019_s16, %s2867_s5 }
  0x86   : > { %p2022_p4 = pnand %p2020_p1, %p2442_p5 }
  0x88   : > { %p2023_p6 = pneg %p2022_p4 }
  0x8a   : > { %p2028_p12 = pnand %p2026_p8, %p2023_p6 }
  0x8c   : > { %2031 = shalt.err (!%p2028_p12)
}
  0x8d   : > { %s2032_s15 = scalar_lea.vmem %s259_s12, 16  ;;  %s2039_s21 = scalar_lea.vmem %s259_s12, 32 }
  0x8e   : > { %p2033_p13 = scmp.ne.s32.totalorder %s259_s12, %s2032_s15  ;;  %p2040_p9 = scmp.lt.s32.totalorder %s259_s12, %s259_s12 }
  0x8f   : > { %p2041_p10 = scmp.lt.s32.totalorder %s2039_s21, %s2032_s15 }
  0x90   : > { %p2035_p3 = pnand %p2033_p13, %p2442_p5 }
  0x91   : > { %p2042_p11 = por %p2041_p10, %p2040_p9 }
  0x92   : > { %p2036_p7 = pneg %p2035_p3 }
  0x94   : > { %p2043_p0 = pnand %p2042_p11, %p2036_p7 }
  0x96   : > { %2046 = shalt.err (!%p2043_p0)
}
  0x97   : > { %1774 = dma.hbm_to_vmem [thread:$0]  (!%p2428_p2), %s2867_s5, 16, %s259_s12, [#allocation13]  }
  0x98   : > { %s36_s18 = sadd.s32 1, %s2261_s8  ;;  %s39_s20 = sadd.s32 1, %s2265_s9 }
  0x99   : > { %p37_p5 = scmp.ge.s32.totalorder %s36_s18, 2  ;;  %s48_s7 = sadd.s32 1, %s2249_s29 }
  0x9a   : > { %p55_p1 = scmp.ne.s32.totalorder %s2249_s29, %s2245_s28  ;;  %p2840_p4 = scmp.eq.s32.totalorder %s2269_s10, 0 }
  0x9b   : > { %s2916_s18 = smov (%p37_p5, %s36_s18), 0  ;;  %s2918_s20 = smov (!%p37_p5, %s39_s20), %s2265_s9 }
  0x9c   : > { %2868 = sst [smem:[#allocation30_spill]] %s2916_s18  ;;  %s2534_s24 = ssub.s32 %s2261_s8, %s2916_s18 }
  0x9d   : > { %p41_p2 = scmp.ge.s32.totalorder %s2918_s20, 2  ;;  %p72_p6 = scmp.eq.s32.totalorder %s2534_s24, 0 }
  0x9e   : > { %p2540_p8 = por %p2840_p4, %p55_p1  ;;  %s184_s16 = sadd.s32 1, %s2225_s23 }
  0x9f   : > { %s2920_s20 = smov (%p41_p2, %s2918_s20), 0  ;;  %p2839_p12 = scmp.lt.s32.totalorder %s2269_s10, 4 }
  0xa0   : > { %s269_s19 = sand.u32 1, %s2249_s29   ;;  %s43_s22 = ssub.s32 %s2265_s9, %s2920_s20 }
  0xa1   : > { %s45_s30 = sor.u32 %s2534_s24, %s43_s22  ;;  %p182_p13 = scmp.eq.s32.totalorder %s43_s22, 0 }
  0xa2   : > { %p46_p3 = scmp.eq.s32.totalorder %s45_s30, 0  ;;  %s1314_s27 = sshll.u32 %s269_s19, 6 }
  0xa3   : > { %s2553_s15 = scalar_select %p182_p13, %s2225_s23, %s184_s16  }
  0xa4   : > { %s2556_s21 = scalar_select %p46_p3, %s2249_s29, %s48_s7  }
  0xa5   : > { %s1370_s6 = sshll.u32 %s2265_s9, 5  ;;  %s273_s2 = scalar_lea.vmem [#allocation3], %s1314_s27 }
  0xa6   : > { %s279_s14 = sadd.s32 %s2261_s8, %s1370_s6  ;;  %s282_s3 = sshll.u32 %s273_s2, 4  ;;  %s2560_s3 = int_to_ptr.vmem [resolvable:$true] %s282_s3 }
  0xa7   : > { %s1317_s4 = sshll.u32 %s279_s14, 6  ;;  %p2571_p7 = pnand %p2839_p12, %p2540_p8 }
  0xa8   : > { %s2565_s13 = scalar_lea.hbm %s2810_s0, %s1317_s4  ;;  %s2575_s2 = scalar_lea.sflag [#allocation4], %s269_s19 }
  0xa9   : > { %s2047_s16 = scalar_lea.hbm %s2565_s13, 1024  ;;  %p2049_p10 = pneg %p2571_p7 }
  0xaa   : > { %p2048_p9 = scmp.ne.s32.totalorder %s2565_s13, %s2047_s16  ;;  %s2052_s18 = scalar_lea.hbm %s2810_s0, 4096 }
  0xab   : > { %p2053_p5 = scmp.lt.u32.totalorder %s2565_s13, %s2810_s0  ;;  %p2054_p1 = scmp.lt.u32.totalorder %s2052_s18, %s2047_s16 }
  0xac   : > { %p2050_p11 = pnand %p2049_p10, %p2048_p9  ;;  %p2056_p8 = scmp.lt.u32.totalorder %s2047_s16, %s2565_s13 }
  0xad   : > { %p2055_p2 = por %p2054_p1, %p2053_p5 }
  0xae   : > { %p2051_p0 = pneg %p2050_p11 }
  0xaf   : > { %p2057_p13 = por %p2056_p8, %p2055_p2 }
  0xb1   : > { %p2058_p3 = pnand %p2057_p13, %p2051_p0 }
  0xb3   : > { %2061 = shalt.err (!%p2058_p3)
}
  0xb4   : > { %s2062_s19 = scalar_lea.vmem %s2560_s3, 1024  ;;  %s2277_s30 = smov [#allocation3]  }
  0xb5   : > { %p2063_p9 = scmp.ne.s32.totalorder %s2560_s3, %s2062_s19  ;;  %s2067_s27 = sshll.u32 %s2277_s30, 4  ;;  %s2068_s27 = int_to_ptr.vmem [resolvable:$false] %s2067_s27 }
  0xb6   : > { %s2069_s6 = scalar_lea.vmem %s2068_s27, 2048  ;;  %p2070_p4 = scmp.lt.s32.totalorder %s2560_s3, %s2068_s27 }
  0xb7   : > { %p2065_p11 = pnand %p2063_p9, %p2049_p10  ;;  %p2071_p5 = scmp.lt.s32.totalorder %s2069_s6, %s2062_s19 }
  0xb9   : > { %p2066_p12 = pneg %p2065_p11  ;;  %p2072_p1 = por %p2071_p5, %p2070_p4 }
  0xbb   : > { %p2073_p2 = pnand %p2072_p1, %p2066_p12 }
  0xbd   : > { %2076 = shalt.err (!%p2073_p2)
}
  0xbe   : > { %s2278_s14 = smov 64   ;;  %s2279_s16 = smov 4  }
  0xbf   : > { %1778 = dma.hbm_to_vmem [thread:$0]  (!%p2571_p7), %s2565_s13, 1024, %s2560_s3, %s2575_s2, %s2866_s11, %s2278_s14, %s2279_s16  }
  0xc0   : > { %s292_s4 = sand.u32 1, %s2269_s10   ;;  %s74_s5 = sadd.s32 1, %s2237_s26 }
  0xc1   : > { %p81_p4 = scmp.ne.s32.totalorder %s2237_s26, %s2233_s25  ;;  %p2871_p12 = scmp.eq.s32.totalorder %s2269_s10, 0 }
  0xc2   : > { %s2613_s18 = scalar_select %p72_p6, %s2237_s26, %s74_s5  }
  0xc3   : > { %p83_p10 = por %p81_p4, %p2871_p12  ;;  %s294_s12 = sand.u32 1, %s2237_s26  }
  0xc4   : > { %s1371_s22 = sshll.u32 %s2261_s8, 10  ;;  %s1318_s19 = sshll.u32 %s294_s12, 6 }
  0xc5   : > { %s2622_s6 = scalar_lea.hbm %s2811_s1, %s1371_s22  ;;  %p2872_p0 = scmp.lt.s32.totalorder %s2269_s10, 4 }
  0xc6   : > { %s296_s13 = scalar_lea.vmem [#allocation6], %s1318_s19  ;;  %s2632_s24 = scalar_lea.sflag [#allocation7], %s292_s4 }
  0xc7   : > { %p2626_p7 = pnand %p2872_p0, %p83_p10  ;;  %s303_s11 = sshll.u32 %s296_s13, 4  ;;  %s2630_s11 = int_to_ptr.vmem [resolvable:$true] %s303_s11 }
  0xc8   : > { %s2077_s7 = scalar_lea.hbm %s2622_s6, 1024  ;;  %s2082_s12 = scalar_lea.hbm %s2811_s1, 2048 }
  0xc9   : > { %p2078_p6 = scmp.ne.s32.totalorder %s2622_s6, %s2077_s7  ;;  %p2079_p8 = pneg %p2626_p7 }
  0xca   : > { %p2083_p9 = scmp.lt.u32.totalorder %s2622_s6, %s2811_s1  ;;  %p2084_p11 = scmp.lt.u32.totalorder %s2082_s12, %s2077_s7 }
  0xcb   : > { %p2080_p13 = pnand %p2079_p8, %p2078_p6  ;;  %p2086_p1 = scmp.lt.u32.totalorder %s2077_s7, %s2622_s6 }
  0xcc   : > { %p2085_p5 = por %p2084_p11, %p2083_p9 }
  0xcd   : > { %p2081_p3 = pneg %p2080_p13 }
  0xce   : > { %p2087_p2 = por %p2086_p1, %p2085_p5 }
  0xd0   : > { %p2088_p4 = pnand %p2087_p2, %p2081_p3 }
  0xd2   : > { %2091 = shalt.err (!%p2088_p4)
}
  0xd3   : > { %s2092_s4 = scalar_lea.vmem %s2630_s11, 1024  ;;  %s2280_s19 = smov [#allocation6]  }
  0xd4   : > { %p2093_p12 = scmp.ne.s32.totalorder %s2630_s11, %s2092_s4  ;;  %s2097_s27 = sshll.u32 %s2280_s19, 4  ;;  %s2098_s27 = int_to_ptr.vmem [resolvable:$false] %s2097_s27 }
  0xd5   : > { %s2099_s13 = scalar_lea.vmem %s2098_s27, 2048  ;;  %p2100_p6 = scmp.lt.s32.totalorder %s2630_s11, %s2098_s27 }
  0xd6   : > { %p2095_p10 = pnand %p2093_p12, %p2079_p8  ;;  %p2101_p13 = scmp.lt.s32.totalorder %s2099_s13, %s2092_s4 }
  0xd8   : > { %p2096_p0 = pneg %p2095_p10  ;;  %p2102_p9 = por %p2101_p13, %p2100_p6 }
  0xda   : > { %p2103_p11 = pnand %p2102_p9, %p2096_p0 }
  0xdc   : > { %2106 = shalt.err (!%p2103_p11)
}
  0xdd   : > { %1781 = dma.hbm_to_vmem [thread:$0]  (!%p2626_p7), %s2622_s6, 1024, %s2630_s11, %s2632_s24, %s2278_s14, %s2278_s14, %s2279_s16  }
  0xde   : > { %p2874_p8 = scmp.ne.s32.totalorder %s2859_s17, 0 }
  0xdf   : > { %s2875_s7 = sld [smem:[#allocation26_spill]] (!%p2874_p8)  ;;  %s317_s2 = sand.u32 (!%p2874_p8), 1, %s2245_s28  }
  0xe0   : > { %315 = sbr.rel (%p2874_p8) target bundleno = 1025 (0x401), region = 44  ;;  %s1322_s5 = sshll.u32 (!%p2874_p8), %s317_s2, 6 }
  0xe1   : > { %s318_s12 = scalar_lea.sflag (!%p2874_p8), [#allocation4], %s317_s2  ;;  %s2666_s22 = scalar_lea.vmem (!%p2874_p8), [#allocation3], %s1322_s5 }
  0xe5   : > { %p2876_p3 = scmp.ne.s32.totalorder (!%p2874_p8), %s2875_s7, 0 }
  0xe7   : > { %2192 = dma.done.wait (%p2876_p3), %s318_s12, 1024  }
  0xe8   : > { %2194 = vsyncadd (%p2876_p3), %s318_s12, 4294966272  ;;  %s2877_s3 = sld [smem:[#allocation25_spill]]  ;;  %s2878_s30 = sld [smem:[#allocation27_spill]] }
  0xe9   : > { %s328_s14 = sand.u32 1, %s2233_s25  }
  0xea   : > { %s1323_s16 = sshll.u32 %s328_s14, 6 }
  0xeb   : > { %s2674_s6 = scalar_lea.vmem [#allocation6], %s1323_s16 }
  0xee   : > { %s326_s4 = sand.u32 1, %s2877_s3   ;;  %p2879_p7 = scmp.ne.s32.totalorder %s2878_s30, 0 }
  0xef   : > { %s327_s17 = scalar_lea.sflag [#allocation7], %s326_s4 }
  0xf0   : > { %2196 = dma.done.wait (%p2879_p7), %s327_s17, 1024  }
  0xf1   : > { %2198 = vsyncadd (%p2879_p7), %s327_s17, 4294966272  ;;  %p2880_p5 = scmp.eq.s32.totalorder %s2877_s3, 0 }
  0xf3   : > { %2200 = dma.done.wait (%p2880_p5), [#allocation7], 2048   ;;  %p2881_p1 = pmov %p2880_p5 }
  0xf5   : > { %2202 = vsyncadd (%p2881_p1), [#allocation7], 4294965248  ;;  %p2882_p2 = pmov %p2881_p1 }
  0xf6   : > { %p2883_p4 = pmov %p2881_p1 }
  0xf7   : > { %2204 = dma.done.wait (%p2882_p2), [#allocation10], 2064  }
  0xf8   : > { %2206 = vsyncadd (%p2883_p4), [#allocation10], 4294965232  ;;  %p2884_p12 = pmov %p2881_p1 }
  0xf9   : > { %p2885_p10 = pmov %p2881_p1 }
  0xfa   : > { %2208 = dma.done.wait (%p2884_p12), [#allocation13], 16  }
  0xfb   : > { %2210 = vsyncadd (%p2885_p10), [#allocation13], 4294967280  ;;  %s2886_s11 = sld [smem:[#allocation22_spill]]  ;;  %s2887_s13 = sld [smem:[#allocation23_spill]] }
 0x101   : > { %s377_s24 = sand.u32 1, %s2886_s11   ;;  %p1329_p0 = scmp.ne.s32.totalorder %s2887_s13, 0 }
 0x102   : > { %s1328_s19 = sshll.u32 %s377_s24, 6  ;;  %v2281_v0 = vmov (!%p1329_p0), 0.0  }
 0x103   : > { %s2695_s27 = scalar_lea.vmem [#allocation14], %s1328_s19  ;;  %387 = sbr.rel (%p1329_p0) target bundleno = 267 (0x10b), region = 72  ;;  %388 = vst [vmem:[#allocation2] sm:$0xff] (!%p1329_p0), %v2281_v0  ;;  %389 = vst [vmem:[#allocation2 + $0x8] sm:$0xff] (!%p1329_p0), %v2281_v0 }
 0x104   : > { %390 = vst [vmem:[#allocation2 + $0x10] sm:$0xff] (!%p1329_p0), %v2281_v0  ;;  %391 = vst [vmem:[#allocation2 + $0x18] sm:$0xff] (!%p1329_p0), %v2281_v0 }
 0x105   : > { %392 = vst [vmem:[#allocation2 + $0x20] sm:$0xff] (!%p1329_p0), %v2281_v0  ;;  %393 = vst [vmem:[#allocation2 + $0x28] sm:$0xff] (!%p1329_p0), %v2281_v0 }
 0x106   : > { %394 = vst [vmem:[#allocation2 + $0x30] sm:$0xff] (!%p1329_p0), %v2281_v0  ;;  %395 = vst [vmem:[#allocation2 + $0x38] sm:$0xff] (!%p1329_p0), %v2281_v0 }
 0x107   : > { %396 = vst [vmem:[#allocation2 + $0x40] sm:$0xff] (!%p1329_p0), %v2281_v0  ;;  %397 = vst [vmem:[#allocation2 + $0x48] sm:$0xff] (!%p1329_p0), %v2281_v0 }
 0x108   : > { %398 = vst [vmem:[#allocation2 + $0x50] sm:$0xff] (!%p1329_p0), %v2281_v0  ;;  %399 = vst [vmem:[#allocation2 + $0x58] sm:$0xff] (!%p1329_p0), %v2281_v0 }
 0x109   : > { %400 = vst [vmem:[#allocation2 + $0x60] sm:$0xff] (!%p1329_p0), %v2281_v0  ;;  %401 = vst [vmem:[#allocation2 + $0x68] sm:$0xff] (!%p1329_p0), %v2281_v0 }
 0x10a   : > { %402 = vst [vmem:[#allocation2 + $0x70] sm:$0xff] %v2281_v0  ;;  %403 = vst [vmem:[#allocation2 + $0x78] sm:$0xff] %v2281_v0 }
 0x10b PF: > { %v1919_v1 = vld [vmem:[%s2674_s6] sm:$0xff]   ;;  %v1920_v2 = vld [vmem:[%s2674_s6 + $0x8] sm:$0xff]   ;;  %v1921_v3 = vld [vmem:[%s2674_s6 + $0x10] sm:$0xff]   ;;  %s2888_s7 = sld [smem:[#allocation23_spill]] }
 0x10c   : > { %1516 = vmatprep.subr.bf16.mxu0 %v1919_v1  ;;  %1724 = vmatprep.subr.bf16.mxu1 %v1919_v1  ;;  %v1922_v4 = vld [vmem:[%s2674_s6 + $0x18] sm:$0xff]   ;;  %v1927_v5 = vld [vmem:[%s2666_s22] sm:$0xff]   ;;  %v1924_v8 = vld [vmem:[%s2674_s6 + $0x28] sm:$0xff]  }
 0x10d   : > { %1517 = vmatpush3.bf16.msra.mxu0 %v1919_v1  ;;  %1732 = vmatpush3.bf16.msra.mxu1 %v1919_v1  ;;  %v1928_v6 = vld [vmem:[%s2666_s22 + $0x20] sm:$0xff]   ;;  %v1925_v9 = vld [vmem:[%s2674_s6 + $0x30] sm:$0xff]   ;;  %v1926_v10 = vld [vmem:[%s2674_s6 + $0x38] sm:$0xff]  }
 0x10e   : > { %1518 = vmatprep.subr.bf16.mxu0 %v1920_v2  ;;  %1725 = vmatprep.subr.bf16.mxu1 %v1920_v2  ;;  %v1923_v7 = vld [vmem:[%s2674_s6 + $0x20] sm:$0xff]   ;;  %v1929_v11 = vld [vmem:[%s2666_s22 + $0x8] sm:$0xff]   ;;  %v1931_v13 = vld [vmem:[%s2666_s22 + $0x10] sm:$0xff]  }
 0x10f   : > { %1532 = vmatprep.mubr.bf16.mxu0 %v1927_v5  ;;  %1540 = vmatprep.mubr.bf16.mxu1 %v1928_v6  ;;  %v1930_v12 = vld [vmem:[%s2666_s22 + $0x28] sm:$0xff]   ;;  %v1932_v14 = vld [vmem:[%s2666_s22 + $0x30] sm:$0xff]   ;;  %v1933_v15 = vld [vmem:[%s2666_s22 + $0x18] sm:$0xff]  }
 0x110   : > { %v1934_v16 = vld [vmem:[%s2666_s22 + $0x38] sm:$0xff]   ;;  %v406_v17 = vld [vmem:[#allocation2 + $0x10] sm:$0xff]  ;;  %v404_v19 = vld [vmem:[#allocation2] sm:$0xff] }
 0x111   : > { %1519 = vmatpush3.bf16.msra.mxu0 %v1920_v2  ;;  %1733 = vmatpush3.bf16.msra.mxu1 %v1920_v2  ;;  %v414_v18 = vld [vmem:[#allocation2 + $0x50] sm:$0xff]  ;;  %v412_v20 = vld [vmem:[#allocation2 + $0x40] sm:$0xff]  ;;  %v407_v23 = vld [vmem:[#allocation2 + $0x18] sm:$0xff]  ;;  %p1346_p6 = scmp.ne.s32.totalorder %s2888_s7, 1 }
 0x112   : > { %1520 = vmatprep.subr.bf16.mxu0 %v1921_v3  ;;  %1726 = vmatprep.subr.bf16.mxu1 %v1921_v3  ;;  %v415_v24 = vld [vmem:[#allocation2 + $0x58] sm:$0xff]  ;;  %v405_v29 = vld [vmem:[#allocation2 + $0x8] sm:$0xff]  ;;  %v410_v41 = vld [vmem:[#allocation2 + $0x30] sm:$0xff] }
 0x113   : > { %v413_v30 = vld [vmem:[#allocation2 + $0x48] sm:$0xff]  ;;  %v418_v42 = vld [vmem:[#allocation2 + $0x70] sm:$0xff]  ;;  %v408_v43 = vld [vmem:[#allocation2 + $0x20] sm:$0xff] }
 0x114   : > { %v416_v44 = vld [vmem:[#allocation2 + $0x60] sm:$0xff]  ;;  %v411_v47 = vld [vmem:[#allocation2 + $0x38] sm:$0xff]  ;;  %v409_v53 = vld [vmem:[#allocation2 + $0x28] sm:$0xff] }
 0x115   : > { %1521 = vmatpush3.bf16.msra.mxu0 %v1921_v3  ;;  %1734 = vmatpush3.bf16.msra.mxu1 %v1921_v3  ;;  %v419_v48 = vld [vmem:[#allocation2 + $0x78] sm:$0xff]  ;;  %v417_v54 = vld [vmem:[#allocation2 + $0x68] sm:$0xff]  ;;  %v697_v1 = vld [vmem:[#allocation8] sm:$0xff] (!%p1346_p6) }
 0x116   : > { %1522 = vmatprep.subr.bf16.mxu0 %v1922_v4  ;;  %1727 = vmatprep.subr.bf16.mxu1 %v1922_v4  ;;  %v698_v2 = vld [vmem:[#allocation8 + $0x8] sm:$0xff] (!%p1346_p6)  ;;  %v699_v3 = vld [vmem:[#allocation8 + $0x10] sm:$0xff] (!%p1346_p6)  ;;  %v700_v5 = vld [vmem:[#allocation8 + $0x18] sm:$0xff] (!%p1346_p6) }
 0x117   : > { %v1664_v6 = vpack.c.bf16 (!%p1346_p6), %v700_v5, %v699_v3 }
 0x119   : > { %1523 = vmatpush3.bf16.msra.mxu0 %v1922_v4  ;;  %1735 = vmatpush3.bf16.msra.mxu1 %v1922_v4  ;;  %v1660_v4 = vpack.c.bf16 (!%p1346_p6), %v698_v2, %v697_v1  ;;  %v1347_v1 = vld [vmem:[#allocation9] ss:$0 sm:$0xff] (!%p1346_p6) }
 0x11a   : > { %1524 = vmatprep.subr.bf16.mxu0 %v1923_v7  ;;  %1728 = vmatprep.subr.bf16.mxu1 %v1923_v7 }
 0x11d   : > { %1525 = vmatpush3.bf16.msra.mxu0 %v1923_v7  ;;  %1736 = vmatpush3.bf16.msra.mxu1 %v1923_v7  ;;  %v701_v7 = vld [vmem:[#allocation8 + $0x20] sm:$0xff] (!%p1346_p6) }
 0x11e   : > { %1526 = vmatprep.subr.bf16.mxu0 %v1924_v8  ;;  %1729 = vmatprep.subr.bf16.mxu1 %v1924_v8 }
 0x121   : > { %1527 = vmatpush3.bf16.msra.mxu0 %v1924_v8  ;;  %1737 = vmatpush3.bf16.msra.mxu1 %v1924_v8  ;;  %v702_v8 = vld [vmem:[#allocation8 + $0x28] sm:$0xff] (!%p1346_p6) }
 0x122   : > { %1528 = vmatprep.subr.bf16.mxu0 %v1925_v9  ;;  %1730 = vmatprep.subr.bf16.mxu1 %v1925_v9 }
 0x125   : > { %1529 = vmatpush3.bf16.msra.mxu0 %v1925_v9  ;;  %1738 = vmatpush3.bf16.msra.mxu1 %v1925_v9  ;;  %v1668_v9 = vpack.c.bf16 (!%p1346_p6), %v702_v8, %v701_v7 }
 0x126   : > { %1530 = vmatprep.subr.bf16.mxu0 %v1926_v10  ;;  %1731 = vmatprep.subr.bf16.mxu1 %v1926_v10 }
 0x129   : > { %1531 = vmatpush3.bf16.msra.mxu0 %v1926_v10  ;;  %1739 = vmatpush3.bf16.msra.mxu1 %v1926_v10 }
 0x12a   : > { %1661 = vmatprep.subr.bf16.mxu0 (!%p1346_p6), %v1660_v4 }
 0x12c   : > { %1533 = vmatmul.mubr.bf16.vlgmr.msra.gmra.mrb[0].mxu0 %v1929_v11  ;;  %1541 = vmatmul.mubr.bf16.vlgmr.msra.gmra.mrb[0].mxu1 %v1930_v12  ;;  %v703_v11 = vld [vmem:[#allocation8 + $0x30] sm:$0xff] (!%p1346_p6)  ;;  %v704_v12 = vld [vmem:[#allocation8 + $0x38] sm:$0xff] (!%p1346_p6) }
 0x12d   : > { %1536 = vmatprep.mubr.bf16.mxu0 %v1931_v13  ;;  %1544 = vmatprep.mubr.bf16.mxu1 %v1932_v14  ;;  %v1672_v13 = vpack.c.bf16 (!%p1346_p6), %v704_v12, %v703_v11  ;;  %v705_v14 = vld [vmem:[#allocation8 + $0x40] sm:$0xff] (!%p1346_p6) }
 0x12e   : > { %1663 = vmatpush3.bf16.msra.mxu0 (!%p1346_p6), %v1660_v4 }
 0x12f   : > { %1665 = vmatprep.subr.bf16.mxu0 (!%p1346_p6), %v1664_v6 }
 0x132   : > { %1667 = vmatpush3.bf16.msra.mxu0 (!%p1346_p6), %v1664_v6 }
 0x133   : > { %1669 = vmatprep.subr.bf16.mxu0 (!%p1346_p6), %v1668_v9 }
 0x134   : > { %1537 = vmatmul.mubr.bf16.gmra.mrb[4].mxu0 %v1933_v15  ;;  %1545 = vmatmul.mubr.bf16.gmra.mrb[4].mxu1 %v1934_v16  ;;  %v706_v15 = vld [vmem:[#allocation8 + $0x48] sm:$0xff] (!%p1346_p6) }
 0x135   : > { %v881_v16 = vld [vmem:[#allocation11] sm:$0xff] (!%p1346_p6) }
 0x136   : > { %1671 = vmatpush3.bf16.msra.mxu0 (!%p1346_p6), %v1668_v9 }
 0x137   : > { %1673 = vmatprep.subr.bf16.mxu0 (!%p1346_p6), %v1672_v13 }
 0x13a   : > { %1675 = vmatpush3.bf16.msra.mxu0 (!%p1346_p6), %v1672_v13 }
 0x1ff   : > { %v1534_v21 = vpop.f32.mrb[0].mxu0  ;;  %v1542_v22 = vpop.f32.mrb[0].mxu1 }
 0x200   : > { %v647_v25 = vadd.f32 %v1534_v21, %v406_v17  ;;  %v655_v26 = vadd.f32 %v1542_v22, %v414_v18  ;;  %v582_v27 = vpop.f32.mrb[1].mxu0  ;;  %v614_v28 = vpop.f32.mrb[1].mxu1  ;;  %v882_v17 = vld [vmem:[#allocation11 + $0x8] sm:$0xff] (!%p1346_p6)  ;;  %v883_v18 = vld [vmem:[#allocation11 + $0x10] sm:$0xff] (!%p1346_p6)  ;;  %v1676_v22 = vpack.c.bf16 (!%p1346_p6), %v706_v15, %v705_v14 }
 0x201   : > { %v645_v31 = vadd.f32 %v582_v27, %v404_v19  ;;  %v653_v32 = vadd.f32 %v614_v28, %v412_v20  ;;  %v1535_v33 = vpop.f32.mrb[2].mxu0  ;;  %v1543_v34 = vpop.f32.mrb[2].mxu1  ;;  %v884_v19 = vld [vmem:[#allocation11 + $0x18] sm:$0xff] (!%p1346_p6)  ;;  %v1692_v20 = vpack.c.bf16 (!%p1346_p6), %v882_v17, %v881_v16 }
 0x202   : > { %663 = vst [vmem:[#allocation2 + $0x10] sm:$0xff] %v647_v25  ;;  %671 = vst [vmem:[#allocation2 + $0x50] sm:$0xff] %v655_v26  ;;  %v648_v35 = vadd.f32 %v1535_v33, %v407_v23  ;;  %v656_v36 = vadd.f32 %v1543_v34, %v415_v24  ;;  %v585_v37 = vpop.f32.mrb[3].mxu0  ;;  %v617_v38 = vpop.f32.mrb[3].mxu1  ;;  %v1696_v21 = vpack.c.bf16 (!%p1346_p6), %v884_v19, %v883_v18  ;;  %v885_v23 = vld [vmem:[#allocation11 + $0x20] sm:$0xff] (!%p1346_p6)  ;;  %v886_v24 = vld [vmem:[#allocation11 + $0x28] sm:$0xff] (!%p1346_p6)  ;;  %1677 = vmatprep.subr.bf16.mxu0 (!%p1346_p6), %v1676_v22 }
 0x203   : > { %661 = vst [vmem:[#allocation2] sm:$0xff] %v645_v31  ;;  %669 = vst [vmem:[#allocation2 + $0x40] sm:$0xff] %v653_v32  ;;  %v646_v39 = vadd.f32 %v585_v37, %v405_v29  ;;  %v654_v40 = vadd.f32 %v617_v38, %v413_v30  ;;  %v707_v25 = vld [vmem:[#allocation8 + $0x50] sm:$0xff] (!%p1346_p6)  ;;  %v708_v26 = vld [vmem:[#allocation8 + $0x58] sm:$0xff] (!%p1346_p6)  ;;  %1693 = vmatprep.subr.bf16.mxu1 (!%p1346_p6), %v1692_v20  ;;  %v1700_v27 = vpack.c.bf16 (!%p1346_p6), %v886_v24, %v885_v23 }
 0x204   : > { %664 = vst [vmem:[#allocation2 + $0x18] sm:$0xff] %v648_v35  ;;  %672 = vst [vmem:[#allocation2 + $0x58] sm:$0xff] %v656_v36  ;;  %1695 = vmatpush3.bf16.msra.mxu1 (!%p1346_p6), %v1692_v20  ;;  %v1680_v28 = vpack.c.bf16 (!%p1346_p6), %v708_v26, %v707_v25  ;;  %v887_v29 = vld [vmem:[#allocation11 + $0x30] sm:$0xff] (!%p1346_p6)  ;;  %v888_v30 = vld [vmem:[#allocation11 + $0x38] sm:$0xff] (!%p1346_p6)  ;;  %1679 = vmatpush3.bf16.msra.mxu0 (!%p1346_p6), %v1676_v22 }
 0x205   : > { %662 = vst [vmem:[#allocation2 + $0x8] sm:$0xff] %v646_v39  ;;  %670 = vst [vmem:[#allocation2 + $0x48] sm:$0xff] %v654_v40  ;;  %1697 = vmatprep.subr.bf16.mxu1 (!%p1346_p6), %v1696_v21  ;;  %v709_v31 = vld [vmem:[#allocation8 + $0x60] sm:$0xff] (!%p1346_p6)  ;;  %v710_v32 = vld [vmem:[#allocation8 + $0x68] sm:$0xff] (!%p1346_p6)  ;;  %v1704_v33 = vpack.c.bf16 (!%p1346_p6), %v888_v30, %v887_v29 }
 0x206   : > { %1681 = vmatprep.subr.bf16.mxu0 (!%p1346_p6), %v1680_v28  ;;  %v1684_v34 = vpack.c.bf16 (!%p1346_p6), %v710_v32, %v709_v31  ;;  %v889_v35 = vld [vmem:[#allocation11 + $0x40] sm:$0xff] (!%p1346_p6)  ;;  %v890_v36 = vld [vmem:[#allocation11 + $0x48] sm:$0xff] (!%p1346_p6)  ;;  %v712_v38 = vld [vmem:[#allocation8 + $0x78] sm:$0xff] (!%p1346_p6) }
 0x207   : > { %v1538_v45 = vpop.f32.mrb[4].mxu0  ;;  %v1546_v46 = vpop.f32.mrb[4].mxu1  ;;  %680 = sbr.rel (%p1346_p6) target bundleno = 997 (0x3e5), region = 76  ;;  %v711_v37 = vld [vmem:[#allocation8 + $0x70] sm:$0xff] (!%p1346_p6)  ;;  %v1708_v39 = vpack.c.bf16 (!%p1346_p6), %v890_v36, %v889_v35 }
 0x208   : > { %v651_v49 = vadd.f32 %v1538_v45, %v410_v41  ;;  %v659_v50 = vadd.f32 %v1546_v46, %v418_v42  ;;  %v598_v51 = vpop.f32.mrb[5].mxu0  ;;  %v630_v52 = vpop.f32.mrb[5].mxu1  ;;  %1699 = vmatpush3.bf16.msra.mxu1 (!%p1346_p6), %v1696_v21  ;;  %1683 = vmatpush3.bf16.msra.mxu0 (!%p1346_p6), %v1680_v28  ;;  %v1688_v40 = vpack.c.bf16 (!%p1346_p6), %v712_v38, %v711_v37  ;;  %v891_v41 = vld [vmem:[#allocation11 + $0x50] sm:$0xff] (!%p1346_p6)  ;;  %v892_v42 = vld [vmem:[#allocation11 + $0x58] sm:$0xff] (!%p1346_p6)  ;;  %v894_v45 = vld [vmem:[#allocation11 + $0x68] sm:$0xff] (!%p1346_p6) }
 0x209   : > { %v649_v55 = vadd.f32 %v598_v51, %v408_v43  ;;  %v657_v56 = vadd.f32 %v630_v52, %v416_v44  ;;  %v1539_v57 = vpop.f32.mrb[6].mxu0  ;;  %v1547_v58 = vpop.f32.mrb[6].mxu1  ;;  %1701 = vmatprep.subr.bf16.mxu1 (!%p1346_p6), %v1700_v27  ;;  %1685 = vmatprep.subr.bf16.mxu0 (!%p1346_p6), %v1684_v34  ;;  %v1712_v43 = vpack.c.bf16 (!%p1346_p6), %v892_v42, %v891_v41  ;;  %v893_v44 = vld [vmem:[#allocation11 + $0x60] sm:$0xff] (!%p1346_p6) }
 0x20a   : > { %667 = vst [vmem:[#allocation2 + $0x30] sm:$0xff] %v651_v49  ;;  %675 = vst [vmem:[#allocation2 + $0x70] sm:$0xff] %v659_v50  ;;  %v652_v59 = vadd.f32 %v1539_v57, %v411_v47  ;;  %v660_v60 = vadd.f32 %v1547_v58, %v419_v48  ;;  %v601_v61 = vpop.f32.mrb[7].mxu0  ;;  %v633_v62 = vpop.f32.mrb[7].mxu1  ;;  %v681_v10 = vld [vmem:[#allocation2] sm:$0xff] (!%p1346_p6)  ;;  %v1716_v47 = vpack.c.bf16 (!%p1346_p6), %v894_v45, %v893_v44  ;;  %v683_v48 = vld [vmem:[#allocation2 + $0x10] sm:$0xff] (!%p1346_p6) }
 0x20b   : > { %665 = vst [vmem:[#allocation2 + $0x20] sm:$0xff] %v649_v55  ;;  %673 = vst [vmem:[#allocation2 + $0x60] sm:$0xff] %v657_v56  ;;  %v650_v63 = vadd.f32 %v601_v61, %v409_v53  ;;  %v658_v0 = vadd.f32 %v633_v62, %v417_v54  ;;  %1580 = vmatprep.mubr.f32.mxu0 (!%p1346_p6), %v681_v10  ;;  %v684_v49 = vld [vmem:[#allocation2 + $0x18] sm:$0xff] (!%p1346_p6)  ;;  %v689_v54 = vld [vmem:[#allocation2 + $0x40] sm:$0xff] (!%p1346_p6) }
 0x20c   : > { %668 = vst [vmem:[#allocation2 + $0x38] sm:$0xff] %v652_v59  ;;  %676 = vst [vmem:[#allocation2 + $0x78] sm:$0xff] %v660_v60  ;;  %1703 = vmatpush3.bf16.msra.mxu1 (!%p1346_p6), %v1700_v27  ;;  %1687 = vmatpush3.bf16.msra.mxu0 (!%p1346_p6), %v1684_v34  ;;  %v682_v46 = vld [vmem:[#allocation2 + $0x8] sm:$0xff] (!%p1346_p6)  ;;  %v691_v56 = vld [vmem:[#allocation2 + $0x50] sm:$0xff] (!%p1346_p6) }
 0x20d   : > { %666 = vst [vmem:[#allocation2 + $0x28] sm:$0xff] %v650_v63  ;;  %674 = vst [vmem:[#allocation2 + $0x68] sm:$0xff] %v658_v0  ;;  %1705 = vmatprep.subr.bf16.mxu1 (!%p1346_p6), %v1704_v33  ;;  %1689 = vmatprep.subr.bf16.mxu0 (!%p1346_p6), %v1688_v40  ;;  %v690_v55 = vld [vmem:[#allocation2 + $0x48] sm:$0xff] (!%p1346_p6)  ;;  %v692_v57 = vld [vmem:[#allocation2 + $0x58] sm:$0xff] (!%p1346_p6) }
 0x20e   : > { %v895_v62 = vld [vmem:[#allocation11 + $0x70] sm:$0xff]  ;;  %v896_v63 = vld [vmem:[#allocation11 + $0x78] sm:$0xff] }
 0x20f   : > { %v1720_v0 = vpack.c.bf16 %v896_v63, %v895_v62 }
 0x210   : > { %1707 = vmatpush3.bf16.msra.mxu1 %v1704_v33  ;;  %1691 = vmatpush3.bf16.msra.mxu0 %v1688_v40 }
 0x211   : > { %1709 = vmatprep.subr.bf16.mxu1 %v1708_v39  ;;  %v687_v52 = vld [vmem:[#allocation2 + $0x30] sm:$0xff] }
 0x212   : > { %v685_v50 = vld [vmem:[#allocation2 + $0x20] sm:$0xff]  ;;  %v695_v60 = vld [vmem:[#allocation2 + $0x70] sm:$0xff] }
 0x213   : > { %1581 = vmatmul.mubr.f32.vlgmr.msra.gmra.mrb[0].mxu0 %v682_v46  ;;  %v688_v53 = vld [vmem:[#allocation2 + $0x38] sm:$0xff]  ;;  %v693_v58 = vld [vmem:[#allocation2 + $0x60] sm:$0xff] }
 0x214   : > { %1711 = vmatpush3.bf16.msra.mxu1 %v1708_v39  ;;  %1583 = vmatprep.mubr.f32.mxu0 %v683_v48  ;;  %v686_v51 = vld [vmem:[#allocation2 + $0x28] sm:$0xff]  ;;  %v696_v61 = vld [vmem:[#allocation2 + $0x78] sm:$0xff] }
 0x215   : > { %1713 = vmatprep.subr.bf16.mxu1 %v1712_v43  ;;  %v694_v59 = vld [vmem:[#allocation2 + $0x68] sm:$0xff] }
 0x217   : > { %1584 = vmatmul.mubr.f32.gmra.mrb[2].mxu0 %v684_v49 }
 0x218   : > { %1715 = vmatpush3.bf16.msra.mxu1 %v1712_v43  ;;  %1586 = vmatprep.mubr.f32.mxu0 %v685_v50  ;;  %v1348_v50 = vld [vmem:[#allocation12] ss:$0 sm:$0xff] }
 0x219   : > { %1717 = vmatprep.subr.bf16.mxu1 %v1716_v47 }
 0x21b   : > { %1587 = vmatmul.mubr.f32.gmra.mrb[4].mxu0 %v686_v51 }
 0x21c   : > { %1719 = vmatpush3.bf16.msra.mxu1 %v1716_v47  ;;  %1589 = vmatprep.mubr.f32.mxu0 %v687_v52 }
 0x21d   : > { %1721 = vmatprep.subr.bf16.mxu1 %v1720_v0 }
 0x21f   : > { %1590 = vmatmul.mubr.f32.gmra.mrb[6].mxu0 %v688_v53 }
 0x220   : > { %1592 = vmatprep.mubr.f32.mxu0 %v689_v54  ;;  %1723 = vmatpush3.bf16.msra.mxu1 %v1720_v0 }
 0x223   : > { %1593 = vmatmul.mubr.f32.gmra.mrb[8].mxu0 %v690_v55 }
 0x224   : > { %1595 = vmatprep.mubr.f32.mxu0 %v691_v56 }
 0x227   : > { %1596 = vmatmul.mubr.f32.gmra.mrb[10].mxu0 %v692_v57 }
 0x228   : > { %1598 = vmatprep.mubr.f32.mxu0 %v693_v58 }
 0x22b   : > { %1599 = vmatmul.mubr.f32.gmra.mrb[12].mxu0 %v694_v59 }
 0x22c   : > { %1601 = vmatprep.mubr.f32.mxu0 %v695_v60 }
 0x22f   : > { %1602 = vmatmul.mubr.f32.gmra.mrb[14].mxu0 %v696_v61 }
 0x2e6   : > { %v1582_v2 = vpop.f32.mrb[0].mxu0 }
 0x2e7   : > { %v792_v3 = vadd.f32 %v1582_v2, %v1347_v1  ;;  %v786_v4 = vpop.f32.mrb[1].mxu0 }
 0x2e8   : > { %v787_v5 = vadd.f32 %v1347_v1, %v786_v4 }
 0x2e9   : > { %v866_v8 = vmax.f32 %v792_v3, 0.0 }
 0x2ea   : > { %v1585_v6 = vpop.f32.mrb[2].mxu0  ;;  %v865_v7 = vmax.f32 %v787_v5, 0.0 }
 0x2eb   : > { %v802_v9 = vadd.f32 %v1585_v6, %v1347_v1  ;;  %v796_v10 = vpop.f32.mrb[3].mxu0 }
 0x2ec   : > { %v797_v11 = vadd.f32 %v1347_v1, %v796_v10  ;;  %1636 = vmatprep.mubr.f32.mxu1 %v865_v7 }
 0x2ed   : > { %1637 = vmatmul.mubr.f32.vlgmr.msra.gmra.mrb[0].mxu1 %v866_v8  ;;  %v868_v14 = vmax.f32 %v802_v9, 0.0 }
 0x2ee   : > { %v867_v12 = vmax.f32 %v797_v11, 0.0  ;;  %v1588_v13 = vpop.f32.mrb[4].mxu0 }
 0x2ef   : > { %v812_v15 = vadd.f32 %v1588_v13, %v1347_v1  ;;  %v806_v16 = vpop.f32.mrb[5].mxu0 }
 0x2f0   : > { %v807_v17 = vadd.f32 %v1347_v1, %v806_v16  ;;  %1639 = vmatprep.mubr.f32.mxu1 %v867_v12 }
 0x2f1   : > { %1640 = vmatmul.mubr.f32.gmra.mrb[2].mxu1 %v868_v14  ;;  %v870_v20 = vmax.f32 %v812_v15, 0.0 }
 0x2f2   : > { %v869_v18 = vmax.f32 %v807_v17, 0.0  ;;  %v1591_v19 = vpop.f32.mrb[6].mxu0 }
 0x2f3   : > { %v822_v21 = vadd.f32 %v1591_v19, %v1347_v1  ;;  %v816_v22 = vpop.f32.mrb[7].mxu0 }
 0x2f4   : > { %v817_v23 = vadd.f32 %v1347_v1, %v816_v22  ;;  %1642 = vmatprep.mubr.f32.mxu1 %v869_v18 }
 0x2f5   : > { %1643 = vmatmul.mubr.f32.gmra.mrb[4].mxu1 %v870_v20  ;;  %v872_v26 = vmax.f32 %v822_v21, 0.0 }
 0x2f6   : > { %v871_v24 = vmax.f32 %v817_v23, 0.0  ;;  %v1594_v25 = vpop.f32.mrb[8].mxu0 }
 0x2f7   : > { %v832_v27 = vadd.f32 %v1594_v25, %v1347_v1  ;;  %v826_v28 = vpop.f32.mrb[9].mxu0 }
 0x2f8   : > { %v827_v29 = vadd.f32 %v1347_v1, %v826_v28  ;;  %1645 = vmatprep.mubr.f32.mxu1 %v871_v24 }
 0x2f9   : > { %1646 = vmatmul.mubr.f32.gmra.mrb[6].mxu1 %v872_v26  ;;  %v874_v32 = vmax.f32 %v832_v27, 0.0 }
 0x2fa   : > { %v873_v30 = vmax.f32 %v827_v29, 0.0  ;;  %v1597_v31 = vpop.f32.mrb[10].mxu0 }
 0x2fb   : > { %v842_v33 = vadd.f32 %v1597_v31, %v1347_v1  ;;  %v836_v34 = vpop.f32.mrb[11].mxu0 }
 0x2fc   : > { %v837_v35 = vadd.f32 %v1347_v1, %v836_v34  ;;  %1648 = vmatprep.mubr.f32.mxu1 %v873_v30 }
 0x2fd   : > { %1649 = vmatmul.mubr.f32.gmra.mrb[8].mxu1 %v874_v32  ;;  %v876_v38 = vmax.f32 %v842_v33, 0.0 }
 0x2fe   : > { %v875_v36 = vmax.f32 %v837_v35, 0.0  ;;  %v1600_v37 = vpop.f32.mrb[12].mxu0 }
 0x2ff   : > { %v852_v39 = vadd.f32 %v1600_v37, %v1347_v1  ;;  %v846_v40 = vpop.f32.mrb[13].mxu0 }
 0x300   : > { %v847_v41 = vadd.f32 %v1347_v1, %v846_v40  ;;  %1651 = vmatprep.mubr.f32.mxu1 %v875_v36 }
 0x301   : > { %1652 = vmatmul.mubr.f32.gmra.mrb[10].mxu1 %v876_v38  ;;  %v878_v44 = vmax.f32 %v852_v39, 0.0 }
 0x302   : > { %v877_v42 = vmax.f32 %v847_v41, 0.0  ;;  %v1603_v43 = vpop.f32.mrb[14].mxu0 }
 0x303   : > { %v862_v45 = vadd.f32 %v1603_v43, %v1347_v1  ;;  %v856_v46 = vpop.f32.mrb[15].mxu0 }
 0x304   : > { %v857_v47 = vadd.f32 %v1347_v1, %v856_v46  ;;  %1654 = vmatprep.mubr.f32.mxu1 %v877_v42 }
 0x305   : > { %1655 = vmatmul.mubr.f32.gmra.mrb[12].mxu1 %v878_v44  ;;  %v880_v49 = vmax.f32 %v862_v45, 0.0 }
 0x306   : > { %v879_v48 = vmax.f32 %v857_v47, 0.0 }
 0x308   : > { %1657 = vmatprep.mubr.f32.mxu1 %v879_v48 }
 0x309   : > { %1658 = vmatmul.mubr.f32.gmra.mrb[14].mxu1 %v880_v49 }
 0x3c0   : > { %v1638_v51 = vpop.f32.mrb[0].mxu1 }
 0x3c1   : > { %v976_v52 = vadd.f32 %v1638_v51, %v1348_v50  ;;  %v970_v53 = vpop.f32.mrb[1].mxu1 }
 0x3c2   : > { %v971_v54 = vadd.f32 %v1348_v50, %v970_v53 }
 0x3c3   : > { %v1050_v55 = vmax.f32 %v976_v52, 0.0 }
 0x3c4   : > { %v1049_v56 = vmax.f32 %v971_v54, 0.0  ;;  %v1641_v57 = vpop.f32.mrb[2].mxu1 }
 0x3c5   : > { %v986_v58 = vadd.f32 %v1641_v57, %v1348_v50  ;;  %v980_v59 = vpop.f32.mrb[3].mxu1 }
 0x3c6   : > { %v1392_v60 = vpack.c.bf16 %v1050_v55, %v1049_v56  ;;  %v981_v61 = vadd.f32 %v1348_v50, %v980_v59 }
 0x3c7   : > { %v1052_v62 = vmax.f32 %v986_v58, 0.0 }
 0x3c8   : > { %1393 = vst [vmem:[%s2695_s27] sm:$0xff] %v1392_v60   ;;  %v1051_v63 = vmax.f32 %v981_v61, 0.0  ;;  %v1644_v0 = vpop.f32.mrb[4].mxu1 }
 0x3c9   : > { %v996_v1 = vadd.f32 %v1644_v0, %v1348_v50  ;;  %v990_v2 = vpop.f32.mrb[5].mxu1 }
 0x3ca   : > { %v1397_v3 = vpack.c.bf16 %v1052_v62, %v1051_v63  ;;  %v991_v4 = vadd.f32 %v1348_v50, %v990_v2 }
 0x3cb   : > { %v1054_v5 = vmax.f32 %v996_v1, 0.0 }
 0x3cc   : > { %1429 = vst [vmem:[%s2695_s27 + $0x8] sm:$0xff] %v1397_v3   ;;  %v1053_v6 = vmax.f32 %v991_v4, 0.0  ;;  %v1647_v7 = vpop.f32.mrb[6].mxu1 }
 0x3cd   : > { %v1006_v8 = vadd.f32 %v1647_v7, %v1348_v50  ;;  %v1000_v9 = vpop.f32.mrb[7].mxu1 }
 0x3ce   : > { %v1402_v10 = vpack.c.bf16 %v1054_v5, %v1053_v6  ;;  %v1001_v11 = vadd.f32 %v1348_v50, %v1000_v9 }
 0x3cf   : > { %v1056_v12 = vmax.f32 %v1006_v8, 0.0 }
 0x3d0   : > { %1430 = vst [vmem:[%s2695_s27 + $0x10] sm:$0xff] %v1402_v10   ;;  %v1055_v13 = vmax.f32 %v1001_v11, 0.0  ;;  %v1650_v14 = vpop.f32.mrb[8].mxu1 }
 0x3d1   : > { %v1016_v15 = vadd.f32 %v1650_v14, %v1348_v50  ;;  %v1010_v16 = vpop.f32.mrb[9].mxu1 }
 0x3d2   : > { %v1407_v17 = vpack.c.bf16 %v1056_v12, %v1055_v13  ;;  %v1011_v18 = vadd.f32 %v1348_v50, %v1010_v16 }
 0x3d3   : > { %v1058_v19 = vmax.f32 %v1016_v15, 0.0 }
 0x3d4   : > { %1431 = vst [vmem:[%s2695_s27 + $0x18] sm:$0xff] %v1407_v17   ;;  %v1057_v20 = vmax.f32 %v1011_v18, 0.0  ;;  %v1653_v21 = vpop.f32.mrb[10].mxu1 }
 0x3d5   : > { %v1026_v22 = vadd.f32 %v1653_v21, %v1348_v50  ;;  %v1020_v23 = vpop.f32.mrb[11].mxu1 }
 0x3d6   : > { %v1412_v24 = vpack.c.bf16 %v1058_v19, %v1057_v20  ;;  %v1021_v25 = vadd.f32 %v1348_v50, %v1020_v23 }
 0x3d7   : > { %v1060_v26 = vmax.f32 %v1026_v22, 0.0 }
 0x3d8   : > { %1432 = vst [vmem:[%s2695_s27 + $0x20] sm:$0xff] %v1412_v24   ;;  %v1059_v27 = vmax.f32 %v1021_v25, 0.0  ;;  %v1656_v28 = vpop.f32.mrb[12].mxu1 }
 0x3d9   : > { %v1036_v29 = vadd.f32 %v1656_v28, %v1348_v50  ;;  %v1030_v30 = vpop.f32.mrb[13].mxu1 }
 0x3da   : > { %v1417_v31 = vpack.c.bf16 %v1060_v26, %v1059_v27  ;;  %v1031_v32 = vadd.f32 %v1348_v50, %v1030_v30 }
 0x3db   : > { %v1062_v33 = vmax.f32 %v1036_v29, 0.0 }
 0x3dc   : > { %1433 = vst [vmem:[%s2695_s27 + $0x28] sm:$0xff] %v1417_v31   ;;  %v1061_v34 = vmax.f32 %v1031_v32, 0.0  ;;  %v1659_v35 = vpop.f32.mrb[14].mxu1 }
 0x3dd   : > { %v1046_v36 = vadd.f32 %v1659_v35, %v1348_v50  ;;  %v1040_v37 = vpop.f32.mrb[15].mxu1 }
 0x3de   : > { %v1422_v38 = vpack.c.bf16 %v1062_v33, %v1061_v34  ;;  %v1041_v39 = vadd.f32 %v1348_v50, %v1040_v37 }
 0x3df   : > { %v1064_v40 = vmax.f32 %v1046_v36, 0.0 }
 0x3e0   : > { %1434 = vst [vmem:[%s2695_s27 + $0x30] sm:$0xff] %v1422_v38   ;;  %v1063_v41 = vmax.f32 %v1041_v39, 0.0 }
 0x3e2   : > { %v1427_v42 = vpack.c.bf16 %v1064_v40, %v1063_v41 }
 0x3e4   : > { %1435 = vst [vmem:[%s2695_s27 + $0x38] sm:$0xff] %v1427_v42  }
 0x3e5 PF: > { %s2889_s2 = sld [smem:[#allocation24_spill]]  ;;  %s2891_s12 = sld [smem:[#allocation28_spill]] }
 0x3e6   : > { %s2892_s4 = sld [smem:[#allocation35_spill]]  ;;  %s1159_s16 = sshll.u32 %s2695_s27, 4  ;;  %s2730_s16 = int_to_ptr.vmem [resolvable:$true] %s1159_s16 }
 0x3e7   : > { %s2734_s17 = scalar_lea.sflag [#allocation5], %s377_s24  ;;  %s2107_s6 = scalar_lea.vmem %s2730_s16, 1024 }
 0x3e8   : > { %p2108_p13 = scmp.ne.s32.totalorder %s2730_s16, %s2107_s6  ;;  %s2282_s11 = smov [#allocation14]  }
 0x3e9   : > { %s2111_s19 = sshll.u32 %s2282_s11, 4  ;;  %s2112_s19 = int_to_ptr.vmem [resolvable:$false] %s2111_s19 }
 0x3ea   : > { %s2113_s13 = scalar_lea.vmem %s2112_s19, 2048  ;;  %p2114_p3 = scmp.lt.s32.totalorder %s2730_s16, %s2112_s19 }
 0x3eb   : > { %s1388_s22 = sshll.u32 %s2889_s2, 10  ;;  %p2893_p9 = scmp.ne.s32.totalorder %s2891_s12, 0 }
 0x3ec   : > { %s2727_s14 = scalar_lea.hbm %s2892_s4, %s1388_s22  ;;  %p2115_p7 = scmp.lt.s32.totalorder %s2113_s13, %s2107_s6 }
 0x3ed   : > { %p2109_p11 = pnand %p2108_p13, %p2893_p9 }
 0x3ee   : > { %p2116_p5 = por %p2115_p7, %p2114_p3 }
 0x3ef   : > { %p2110_p8 = pneg %p2109_p11 }
 0x3f1   : > { %p2117_p1 = pnand %p2116_p5, %p2110_p8 }
 0x3f3   : > { %2120 = shalt.err (!%p2117_p1)
}
 0x3f4   : > { %s2121_s24 = scalar_lea.hbm %s2727_s14, 1024  ;;  %s2125_s2 = scalar_lea.hbm %s2892_s4, 2048 }
 0x3f5   : > { %p2122_p2 = scmp.ne.s32.totalorder %s2727_s14, %s2121_s24  ;;  %p2126_p10 = scmp.lt.u32.totalorder %s2727_s14, %s2892_s4 }
 0x3f6   : > { %p2127_p0 = scmp.lt.u32.totalorder %s2125_s2, %s2121_s24  ;;  %p2129_p13 = scmp.lt.u32.totalorder %s2121_s24, %s2727_s14 }
 0x3f7   : > { %p2123_p4 = pnand %p2122_p2, %p2893_p9 }
 0x3f8   : > { %p2128_p6 = por %p2127_p0, %p2126_p10 }
 0x3f9   : > { %p2124_p12 = pneg %p2123_p4 }
 0x3fa   : > { %p2130_p11 = por %p2129_p13, %p2128_p6 }
 0x3fc   : > { %p2131_p8 = pnand %p2130_p11, %p2124_p12 }
 0x3fe   : > { %2134 = shalt.err (!%p2131_p8)
}
 0x3ff   : > { %s2283_s3 = smov 64   ;;  %s2284_s30 = smov 4  }
 0x400   : > { %1760 = dma.vmem_to_hbm [thread:$0]  (%p2893_p9), %s2730_s16, 1024, %s2727_s14, %s2734_s17, %s2283_s3, %s2283_s3, %s2284_s30  }
 0x401 PF: > { %s2894_s6 = sld [smem:[#allocation21_spill]]  ;;  %s2895_s11 = sld [smem:[#allocation29_spill]] }
 0x402   : > { %p1795_p3 = scmp.ge.s32.totalorder %s2269_s10, 2 }
 0x407   : > { %s1174_s19 = sand.u32 1, %s2894_s6   ;;  %p2896_p7 = scmp.ne.s32.totalorder %s2895_s11, 0 }
 0x408   : > { %s1175_s13 = scalar_lea.sflag [#allocation5], %s1174_s19 }
 0x409   : > { %p1783_p5 = pnand %p1795_p3, %p2896_p7 }
 0x40b   : > { %2212 = dma.done.wait (!%p1783_p5), %s1175_s13, 1024  }
 0x40c   : > { %2214 = vsyncadd (!%p1783_p5), %s1175_s13, 4294966272  ;;  %s27_s10 = sadd.s32 1, %s2269_s10   ;;  %s2898_s27 = sld [smem:[#allocation22_spill]] }
 0x40d   : > { %p2763_p1 = scmp.ge.s32.totalorder %s27_s10, 6   ;;  %s2899_s12 = smov %s2556_s21 }
 0x40e   : > { %s2900_s14 = sld [smem:[#allocation30_spill]]  ;;  %s2903_s22 = smov %s2225_s23 }
 0x40f   : > { %s2904_s23 = smov %s2553_s15  ;;  %s2905_s24 = smov %s2233_s25 }
 0x410   : > { %s2906_s25 = smov %s2237_s26  ;;  %s2907_s26 = smov %s2613_s18 }
 0x411   : > { %s2911_s30 = smov %s2261_s8  ;;  %s2912_s7 = smov %s2265_s9 }
 0x412   : > { %s2902_s21 = smov %s2898_s27  ;;  %s2908_s27 = smov %s2245_s28 }
 0x413   : > { %s2909_s28 = smov %s2249_s29  ;;  %s2910_s29 = smov %s2899_s12 }
 0x414   : > { %s2913_s8 = smov %s2900_s14  ;;  %s2914_s9 = smov %s2920_s20 }
 0x415   :  { %26 = sbr.rel (!%p2763_p1) target bundleno = 20 (0x14), region = 126 }
 0x41c   :  { %1180 = vsyncpa [#allocation4], 1 }
 0x41d   :  { %1182 = vsyncpa [#allocation4 + $0x1], 1 }
 0x41e   :  { %1183 = vsyncpa [#allocation7], 1 }
 0x41f   :  { %1185 = vsyncpa [#allocation7 + $0x1], 1 }
 0x420   :  { %1186 = vsyncpa [#allocation10], 1 }
 0x421   :  { %1187 = vsyncpa [#allocation13], 1 }
 0x422   :  { %1188 = vsyncpa [#allocation5], 1 }
 0x423   :  { %1190 = vsyncpa [#allocation5 + $0x1], 1 }

</bundles_post_ra>
